<compile_context>
chip_gen: v5e
topology: v5e:2x2
jax: 0.10.0
libtpu: 0.0.40
codegen_flags: <defaults>
</compile_context>

<pallas_src>
import math

import jax
import jax.numpy as jnp
import numpy as np
from jax import lax
from jax.experimental import pallas as pl
from jax.experimental.pallas import tpu as pltpu

# Small deterministic problem size consistent with the module.
B, S, D, H, DFF, NLAYERS = 2, 8, 32, 4, 64, 2
DK = D // H
BS = B * S
EPS = 1e-6
SCALE = 1.0 / math.sqrt(DK)
NEG_INF = -1e9


def _layer_norm(x, a, b):
    # Annotated-Transformer LayerNorm: unbiased std, eps added to the *std*.
    # Divide is done as rsqrt (EUP) + multiply; rsqrt(var + EPS^2) matches
    # 1/(std + EPS) to ~1e-6 relative.
    mean = jnp.mean(x, axis=-1, keepdims=True)
    var = jnp.sum((x - mean) ** 2, axis=-1, keepdims=True) * (1.0 / (D - 1))
    inv_std = lax.rsqrt(var + EPS * EPS)
    return a * (x - mean) * inv_std + b


# ----------------------------- fused Pallas kernel -----------------------------------


def encoder_kernel(x_ref, bias_ref, wqkv_ref, bqkv_ref, wo_ref,
                   w1_ref, bw1_ref, w2_ref, vec_ref, fin_ref, o_ref):
    """Whole encoder (NLAYERS pre-norm layers + final LayerNorm) in one invocation.

    No grid: every operand (activation + packed weights, ~80 KB total) is resident
    in VMEM for the whole call and the static layer loop is unrolled in the kernel.
    The activation is processed as a single (B*S, D) slab; batch separation inside
    attention is enforced by the precomputed additive block-diagonal/key mask.
    """
    x = x_ref[...].astype(jnp.float32)          # (B*S, D) activation slab
    bias = bias_ref[...]                        # (B*S, B*S) additive mask (0 / -1e9)

    for l in range(NLAYERS):                    # static unroll, NLAYERS is a constant
        vl = vec_ref[l]                         # (6, D): a1, b1, bo, a2, b2, bw2
        a1, b1 = vl[0:1], vl[1:2]
        bo = vl[2:3]
        a2, b2 = vl[3:4], vl[4:5]
        bw2 = vl[5:6]

        # --- self-attention sublayer: x + SelfAttn(LayerNorm(x)) ---------------------
        n1 = _layer_norm(x, a1, b1)
        # One lane-dense (B*S, D) @ (D, 3D) matmul produces q, k, v for every head.
        qkv = jnp.dot(n1, wqkv_ref[l],
                      preferred_element_type=jnp.float32) + bqkv_ref[l]   # (BS, 3D)

        heads = []
        for h in range(H):                      # static unroll over heads
            lo = h * DK
            qh = qkv[:, lo:lo + DK]                         # (BS, DK)
            kh = qkv[:, D + lo:D + lo + DK]                 # (BS, DK)
            vh = qkv[:, 2 * D + lo:2 * D + lo + DK]         # (BS, DK)
            # scores over the flattened (batch*seq) key axis; the additive bias
            # kills cross-batch and padded-key entries (exp -> exactly 0).
            s = lax.dot_general(qh, kh, (((1,), (1,)), ((), ())),
                                preferred_element_type=jnp.float32)       # (BS, BS)
            s = s * SCALE + bias
            m = jnp.max(s, axis=-1, keepdims=True)
            p = jnp.exp(s - m)
            # EUP approximate reciprocal keeps the softmax divide off the VPU slot.
            p = p * pl.reciprocal(jnp.sum(p, axis=-1, keepdims=True), approx=True)
            heads.append(jnp.dot(p, vh, preferred_element_type=jnp.float32))
        attn = jnp.concatenate(heads, axis=-1)              # (BS, D) == concat-heads
        # Single fused output projection (concat-heads @ Wo); dropout == identity.
        x = x + jnp.dot(attn, wo_ref[l],
                        preferred_element_type=jnp.float32) + bo

        # --- feed-forward sublayer: x + FFN(LayerNorm(x)) ----------------------------
        n2 = _layer_norm(x, a2, b2)
        h1 = jnp.maximum(
            jnp.dot(n2, w1_ref[l], preferred_element_type=jnp.float32) + bw1_ref[l],
            0.0)
        x = x + jnp.dot(h1, w2_ref[l], preferred_element_type=jnp.float32) + bw2

    # --- final LayerNorm fused into the same kernel -----------------------------------
    fin = fin_ref[...]                                       # (2, D): af, bf
    o_ref[...] = _layer_norm(x, fin[0:1], fin[1:2]).astype(o_ref.dtype)


# ----------------------------- wrappers ----------------------------------------------


def pack_params(layer_params, af, bf):
    """Pack per-layer parameters into a few stacked, lane-dense VMEM-resident buffers.

    layer_params[l] = (a1, b1, wq, bq, wk, bk, wv, bv, wo, bo, a2, b2, w1, bw1, w2, bw2)
    """
    wqkv = jnp.stack([jnp.concatenate([p[2], p[4], p[6]], axis=1)
                      for p in layer_params])                       # (L, D, 3D)
    bqkv = jnp.stack([jnp.concatenate([p[3], p[5], p[7]], axis=1)
                      for p in layer_params])                       # (L, 1, 3D)
    wo = jnp.stack([p[8] for p in layer_params])                    # (L, D, D)
    w1 = jnp.stack([p[12] for p in layer_params])                   # (L, D, DFF)
    bw1 = jnp.stack([p[13] for p in layer_params])                  # (L, 1, DFF)
    w2 = jnp.stack([p[14] for p in layer_params])                   # (L, DFF, D)
    vecs = jnp.stack([jnp.concatenate([p[0], p[1], p[9], p[10], p[11], p[15]], axis=0)
                      for p in layer_params])                       # (L, 6, D)
    fin = jnp.concatenate([af, bf], axis=0)                         # (2, D)
    return wqkv, bqkv, wo, w1, bw1, w2, vecs, fin


def encoder_forward(x, layer_params, af, bf, mask=None):
    """Pass the input (and mask) through each layer in turn, then final LayerNorm."""
    if mask is None:
        mask = jnp.ones((B, 1, S), jnp.float32)
    packed = pack_params(layer_params, af, bf)

    # Layout plumbing in the wrapper (free in XLA): flatten batch into rows.
    x2 = x.reshape(BS, D)

    # Hoisted additive attention bias (B*S, B*S): 0 where query and key share a batch
    # AND the key is unmasked, -1e9 otherwise.  Applies the padding mask once and
    # keeps batches independent after the flatten.
    key_ok = mask[:, 0, :].reshape(BS) > 0
    rows = jnp.arange(BS) // S
    same_batch = rows[:, None] == rows[None, :]
    bias = jnp.where(same_batch & key_ok[None, :], 0.0, NEG_INF).astype(jnp.float32)

    vmem = pl.BlockSpec(memory_space=pltpu.MemorySpace.VMEM)
    out2 = pl.pallas_call(
        encoder_kernel,
        out_shape=jax.ShapeDtypeStruct((BS, D), x.dtype),
        in_specs=[vmem] * (2 + len(packed)),   # whole arrays, VMEM-resident, no grid
        out_specs=vmem,
    )(x2, bias, *packed)
    return out2.reshape(B, S, D)


# ----------------------------- reference + params ------------------------------------


def ref_encoder(x, mask, layer_params, af, bf):
    def ln(y, a, b):
        mean = y.mean(-1, keepdims=True)
        std = jnp.sqrt(((y - mean) ** 2).sum(-1, keepdims=True) / (D - 1))
        return a * (y - mean) / (std + EPS) + b

    m = mask[:, 0, :]
    for p in layer_params:
        a1, b1, wq, bq, wk, bk, wv, bv, wo, bo, a2, b2, w1, bw1, w2, bw2 = p
        n1 = ln(x, a1, b1)
        q = n1 @ wq + bq
        k = n1 @ wk + bk
        v = n1 @ wv + bv
        qh = q.reshape(B, S, H, DK).transpose(0, 2, 1, 3)
        kh = k.reshape(B, S, H, DK).transpose(0, 2, 1, 3)
        vh = v.reshape(B, S, H, DK).transpose(0, 2, 1, 3)
        scores = jnp.einsum('bhqd,bhkd->bhqk', qh, kh) / math.sqrt(DK)
        scores = jnp.where(m[:, None, None, :] > 0, scores, -1e9)
        pr = jax.nn.softmax(scores, axis=-1)
        oh = jnp.einsum('bhqk,bhkd->bhqd', pr, vh)
        o = oh.transpose(0, 2, 1, 3).reshape(B, S, D)
        x = x + (o @ wo + bo)
        n2 = ln(x, a2, b2)
        x = x + (jnp.maximum(n2 @ w1 + bw1, 0.0) @ w2 + bw2)
    return ln(x, af, bf)


def make_params(key):
    layer_params = []
    for _ in range(NLAYERS):
        keys = jax.random.split(key, 9)
        key = keys[0]
        a1 = 1.0 + 0.02 * jax.random.normal(keys[1], (1, D), jnp.float32)
        b1 = 0.02 * jax.random.normal(keys[2], (1, D), jnp.float32)
        wq = 0.05 * jax.random.normal(keys[3], (D, D), jnp.float32)
        wk = 0.05 * jax.random.normal(keys[4], (D, D), jnp.float32)
        wv = 0.05 * jax.random.normal(keys[5], (D, D), jnp.float32)
        wo = 0.05 * jax.random.normal(keys[6], (D, D), jnp.float32)
        bq = jnp.zeros((1, D), jnp.float32)
        bk = jnp.zeros((1, D), jnp.float32)
        bv = jnp.zeros((1, D), jnp.float32)
        bo = jnp.zeros((1, D), jnp.float32)
        a2 = 1.0 + 0.02 * jax.random.normal(keys[7], (1, D), jnp.float32)
        b2 = 0.02 * jax.random.normal(keys[8], (1, D), jnp.float32)
        keys2 = jax.random.split(key, 3)
        key = keys2[0]
        w1 = 0.05 * jax.random.normal(keys2[1], (D, DFF), jnp.float32)
        bw1 = jnp.zeros((1, DFF), jnp.float32)
        w2 = 0.05 * jax.random.normal(keys2[2], (DFF, D), jnp.float32)
        bw2 = jnp.zeros((1, D), jnp.float32)
        layer_params.append((a1, b1, wq, bq, wk, bk, wv, bv, wo, bo,
                             a2, b2, w1, bw1, w2, bw2))
    k1, k2 = jax.random.split(key)
    af = 1.0 + 0.02 * jax.random.normal(k1, (1, D), jnp.float32)
    bf = 0.02 * jax.random.normal(k2, (1, D), jnp.float32)
    return layer_params, af, bf


if __name__ == "__main__":
    key = jax.random.PRNGKey(0)
    kx, kp = jax.random.split(key)
    x = jax.random.normal(kx, (B, S, D), jnp.float32)
    # padding mask: batch 1 has its last two key positions masked out
    mask = jnp.ones((B, 1, S), jnp.float32).at[1, :, S - 2:].set(0.0)

    layer_params, af, bf = make_params(kp)

    out = encoder_forward(x, layer_params, af, bf, mask)
    out = jax.block_until_ready(out)

    ref = ref_encoder(x, mask, layer_params, af, bf)
    # Tolerance absorbs the EUP approximate-reciprocal softmax denominator
    # (LayerNorm uses full-precision rsqrt, so its deviation is ~1e-6).
    np.testing.assert_allclose(np.asarray(out), np.asarray(ref), atol=3e-3, rtol=3e-3)

    print("KERNEL_OK")
</pallas_src>

<mosaic_0001>
module attributes {stable_mosaic.version = 11 : i64} {
  func.func @encoder_kernel(%arg0: memref<16x32xf32, #tpu.memory_space<vmem>>, %arg1: memref<16x16xf32, #tpu.memory_space<vmem>>, %arg2: memref<2x32x96xf32, #tpu.memory_space<vmem>>, %arg3: memref<2x1x96xf32, #tpu.memory_space<vmem>>, %arg4: memref<2x32x32xf32, #tpu.memory_space<vmem>>, %arg5: memref<2x32x64xf32, #tpu.memory_space<vmem>>, %arg6: memref<2x1x64xf32, #tpu.memory_space<vmem>>, %arg7: memref<2x64x32xf32, #tpu.memory_space<vmem>>, %arg8: memref<2x6x32xf32, #tpu.memory_space<vmem>>, %arg9: memref<2x32xf32, #tpu.memory_space<vmem>>, %arg10: memref<16x32xf32, #tpu.memory_space<vmem>>) attributes {dimension_semantics = [], scalar_prefetch = 0 : i64, scratch_operands = 0 : i64, tpu.core_type = #tpu.core_type<tc>} {
    %c0 = arith.constant 0 : index
    %c0_0 = arith.constant 0 : index
    %0 = vector.load %arg0[%c0, %c0_0] : memref<16x32xf32, #tpu.memory_space<vmem>>, vector<16x32xf32>
    %c0_1 = arith.constant 0 : index
    %c0_2 = arith.constant 0 : index
    %1 = vector.load %arg1[%c0_1, %c0_2] : memref<16x16xf32, #tpu.memory_space<vmem>>, vector<16x16xf32>
    %c0_3 = arith.constant 0 : index
    %c0_4 = arith.constant 0 : index
    %c0_5 = arith.constant 0 : index
    %2 = vector.load %arg8[%c0_3, %c0_4, %c0_5] : memref<2x6x32xf32, #tpu.memory_space<vmem>>, vector<1x6x32xf32>
    %3 = vector.shape_cast %2 : vector<1x6x32xf32> to vector<6x32xf32>
    %4 = vector.extract_strided_slice %3 {offsets = [0, 0], sizes = [1, 32], strides = [1, 1]} : vector<6x32xf32> to vector<1x32xf32>
    %5 = vector.extract_strided_slice %3 {offsets = [1, 0], sizes = [1, 32], strides = [1, 1]} : vector<6x32xf32> to vector<1x32xf32>
    %6 = vector.extract_strided_slice %3 {offsets = [2, 0], sizes = [1, 32], strides = [1, 1]} : vector<6x32xf32> to vector<1x32xf32>
    %7 = vector.extract_strided_slice %3 {offsets = [3, 0], sizes = [1, 32], strides = [1, 1]} : vector<6x32xf32> to vector<1x32xf32>
    %8 = vector.extract_strided_slice %3 {offsets = [4, 0], sizes = [1, 32], strides = [1, 1]} : vector<6x32xf32> to vector<1x32xf32>
    %9 = vector.extract_strided_slice %3 {offsets = [5, 0], sizes = [1, 32], strides = [1, 1]} : vector<6x32xf32> to vector<1x32xf32>
    %cst = arith.constant dense<0.000000e+00> : vector<16xf32>
    %10 = vector.multi_reduction <add>, %0, %cst [1] : vector<16x32xf32> to vector<16xf32>
    %11 = vector.shape_cast %10 : vector<16xf32> to vector<16x1xf32>
    %cst_6 = arith.constant 3.200000e+01 : f32
    %12 = vector.broadcast %cst_6 : f32 to vector<16x1xf32>
    %13 = arith.divf %11, %12 : vector<16x1xf32>
    %14 = vector.broadcast %13 : vector<16x1xf32> to vector<16x32xf32>
    %15 = arith.subf %0, %14 : vector<16x32xf32>
    %16 = arith.mulf %15, %15 : vector<16x32xf32>
    %cst_7 = arith.constant dense<0.000000e+00> : vector<16xf32>
    %17 = vector.multi_reduction <add>, %16, %cst_7 [1] : vector<16x32xf32> to vector<16xf32>
    %18 = vector.shape_cast %17 : vector<16xf32> to vector<16x1xf32>
    %cst_8 = arith.constant 0.0322580636 : f32
    %19 = vector.broadcast %cst_8 : f32 to vector<16x1xf32>
    %20 = arith.mulf %18, %19 : vector<16x1xf32>
    %cst_9 = arith.constant 9.99999996E-13 : f32
    %21 = vector.broadcast %cst_9 : f32 to vector<16x1xf32>
    %22 = arith.addf %20, %21 : vector<16x1xf32>
    %23 = math.rsqrt %22 : vector<16x1xf32>
    %24 = vector.broadcast %13 : vector<16x1xf32> to vector<16x32xf32>
    %25 = arith.subf %0, %24 : vector<16x32xf32>
    %26 = vector.broadcast %4 : vector<1x32xf32> to vector<16x32xf32>
    %27 = arith.mulf %26, %25 : vector<16x32xf32>
    %28 = vector.broadcast %23 : vector<16x1xf32> to vector<16x32xf32>
    %29 = arith.mulf %27, %28 : vector<16x32xf32>
    %30 = vector.broadcast %5 : vector<1x32xf32> to vector<16x32xf32>
    %31 = arith.addf %29, %30 : vector<16x32xf32>
    %c0_10 = arith.constant 0 : index
    %c0_11 = arith.constant 0 : index
    %c0_12 = arith.constant 0 : index
    %32 = vector.load %arg2[%c0_10, %c0_11, %c0_12] : memref<2x32x96xf32, #tpu.memory_space<vmem>>, vector<1x32x96xf32>
    %33 = vector.shape_cast %32 : vector<1x32x96xf32> to vector<32x96xf32>
    %cst_13 = arith.constant dense<0.000000e+00> : vector<16x96xf32>
    %34 = tpu.matmul %31, %33, %cst_13 {dimension_numbers = #tpu.dot_dimension_numbers<[1], [0], [0], [1], [0, 0, 1, 1], [], []>} : vector<16x32xf32>, vector<32x96xf32>, vector<16x96xf32> -> vector<16x96xf32>
    %c0_14 = arith.constant 0 : index
    %c0_15 = arith.constant 0 : index
    %c0_16 = arith.constant 0 : index
    %35 = vector.load %arg3[%c0_14, %c0_15, %c0_16] : memref<2x1x96xf32, #tpu.memory_space<vmem>>, vector<1x1x96xf32>
    %36 = vector.shape_cast %35 : vector<1x1x96xf32> to vector<1x96xf32>
    %37 = vector.broadcast %36 : vector<1x96xf32> to vector<16x96xf32>
    %38 = arith.addf %34, %37 : vector<16x96xf32>
    %39 = vector.extract_strided_slice %38 {offsets = [0, 0], sizes = [16, 8], strides = [1, 1]} : vector<16x96xf32> to vector<16x8xf32>
    %40 = vector.extract_strided_slice %38 {offsets = [0, 32], sizes = [16, 8], strides = [1, 1]} : vector<16x96xf32> to vector<16x8xf32>
    %41 = vector.extract_strided_slice %38 {offsets = [0, 64], sizes = [16, 8], strides = [1, 1]} : vector<16x96xf32> to vector<16x8xf32>
    %cst_17 = arith.constant dense<0.000000e+00> : vector<16x16xf32>
    %42 = tpu.matmul %39, %40, %cst_17 {dimension_numbers = #tpu.dot_dimension_numbers<[1], [1], [0], [0], [0, 0, 1, 0], [], []>} : vector<16x8xf32>, vector<16x8xf32>, vector<16x16xf32> -> vector<16x16xf32>
    %cst_18 = arith.constant 0.353553385 : f32
    %43 = vector.broadcast %cst_18 : f32 to vector<16x16xf32>
    %44 = arith.mulf %42, %43 : vector<16x16xf32>
    %45 = arith.addf %44, %1 : vector<16x16xf32>
    %cst_19 = arith.constant dense<0xFF800000> : vector<16xf32>
    %46 = vector.multi_reduction <maximumf>, %45, %cst_19 [1] : vector<16x16xf32> to vector<16xf32>
    %47 = vector.shape_cast %46 : vector<16xf32> to vector<16x1xf32>
    %48 = vector.broadcast %47 : vector<16x1xf32> to vector<16x16xf32>
    %49 = arith.subf %45, %48 : vector<16x16xf32>
    %50 = math.exp %49 : vector<16x16xf32>
    %cst_20 = arith.constant dense<0.000000e+00> : vector<16xf32>
    %51 = vector.multi_reduction <add>, %50, %cst_20 [1] : vector<16x16xf32> to vector<16xf32>
    %52 = vector.shape_cast %51 : vector<16xf32> to vector<16x1xf32>
    %53 = tpu.reciprocal %52 {approx = true} : vector<16x1xf32> -> vector<16x1xf32>
    %54 = vector.broadcast %53 : vector<16x1xf32> to vector<16x16xf32>
    %55 = arith.mulf %50, %54 : vector<16x16xf32>
    %cst_21 = arith.constant dense<0.000000e+00> : vector<16x8xf32>
    %56 = tpu.matmul %55, %41, %cst_21 {dimension_numbers = #tpu.dot_dimension_numbers<[1], [0], [0], [1], [0, 0, 1, 1], [], []>} : vector<16x16xf32>, vector<16x8xf32>, vector<16x8xf32> -> vector<16x8xf32>
    %57 = vector.extract_strided_slice %38 {offsets = [0, 8], sizes = [16, 8], strides = [1, 1]} : vector<16x96xf32> to vector<16x8xf32>
    %58 = vector.extract_strided_slice %38 {offsets = [0, 40], sizes = [16, 8], strides = [1, 1]} : vector<16x96xf32> to vector<16x8xf32>
    %59 = vector.extract_strided_slice %38 {offsets = [0, 72], sizes = [16, 8], strides = [1, 1]} : vector<16x96xf32> to vector<16x8xf32>
    %cst_22 = arith.constant dense<0.000000e+00> : vector<16x16xf32>
    %60 = tpu.matmul %57, %58, %cst_22 {dimension_numbers = #tpu.dot_dimension_numbers<[1], [1], [0], [0], [0, 0, 1, 0], [], []>} : vector<16x8xf32>, vector<16x8xf32>, vector<16x16xf32> -> vector<16x16xf32>
    %cst_23 = arith.constant 0.353553385 : f32
    %61 = vector.broadcast %cst_23 : f32 to vector<16x16xf32>
    %62 = arith.mulf %60, %61 : vector<16x16xf32>
    %63 = arith.addf %62, %1 : vector<16x16xf32>
    %cst_24 = arith.constant dense<0xFF800000> : vector<16xf32>
    %64 = vector.multi_reduction <maximumf>, %63, %cst_24 [1] : vector<16x16xf32> to vector<16xf32>
    %65 = vector.shape_cast %64 : vector<16xf32> to vector<16x1xf32>
    %66 = vector.broadcast %65 : vector<16x1xf32> to vector<16x16xf32>
    %67 = arith.subf %63, %66 : vector<16x16xf32>
    %68 = math.exp %67 : vector<16x16xf32>
    %cst_25 = arith.constant dense<0.000000e+00> : vector<16xf32>
    %69 = vector.multi_reduction <add>, %68, %cst_25 [1] : vector<16x16xf32> to vector<16xf32>
    %70 = vector.shape_cast %69 : vector<16xf32> to vector<16x1xf32>
    %71 = tpu.reciprocal %70 {approx = true} : vector<16x1xf32> -> vector<16x1xf32>
    %72 = vector.broadcast %71 : vector<16x1xf32> to vector<16x16xf32>
    %73 = arith.mulf %68, %72 : vector<16x16xf32>
    %cst_26 = arith.constant dense<0.000000e+00> : vector<16x8xf32>
    %74 = tpu.matmul %73, %59, %cst_26 {dimension_numbers = #tpu.dot_dimension_numbers<[1], [0], [0], [1], [0, 0, 1, 1], [], []>} : vector<16x16xf32>, vector<16x8xf32>, vector<16x8xf32> -> vector<16x8xf32>
    %75 = vector.extract_strided_slice %38 {offsets = [0, 16], sizes = [16, 8], strides = [1, 1]} : vector<16x96xf32> to vector<16x8xf32>
    %76 = vector.extract_strided_slice %38 {offsets = [0, 48], sizes = [16, 8], strides = [1, 1]} : vector<16x96xf32> to vector<16x8xf32>
    %77 = vector.extract_strided_slice %38 {offsets = [0, 80], sizes = [16, 8], strides = [1, 1]} : vector<16x96xf32> to vector<16x8xf32>
    %cst_27 = arith.constant dense<0.000000e+00> : vector<16x16xf32>
    %78 = tpu.matmul %75, %76, %cst_27 {dimension_numbers = #tpu.dot_dimension_numbers<[1], [1], [0], [0], [0, 0, 1, 0], [], []>} : vector<16x8xf32>, vector<16x8xf32>, vector<16x16xf32> -> vector<16x16xf32>
    %cst_28 = arith.constant 0.353553385 : f32
    %79 = vector.broadcast %cst_28 : f32 to vector<16x16xf32>
    %80 = arith.mulf %78, %79 : vector<16x16xf32>
    %81 = arith.addf %80, %1 : vector<16x16xf32>
    %cst_29 = arith.constant dense<0xFF800000> : vector<16xf32>
    %82 = vector.multi_reduction <maximumf>, %81, %cst_29 [1] : vector<16x16xf32> to vector<16xf32>
    %83 = vector.shape_cast %82 : vector<16xf32> to vector<16x1xf32>
    %84 = vector.broadcast %83 : vector<16x1xf32> to vector<16x16xf32>
    %85 = arith.subf %81, %84 : vector<16x16xf32>
    %86 = math.exp %85 : vector<16x16xf32>
    %cst_30 = arith.constant dense<0.000000e+00> : vector<16xf32>
    %87 = vector.multi_reduction <add>, %86, %cst_30 [1] : vector<16x16xf32> to vector<16xf32>
    %88 = vector.shape_cast %87 : vector<16xf32> to vector<16x1xf32>
    %89 = tpu.reciprocal %88 {approx = true} : vector<16x1xf32> -> vector<16x1xf32>
    %90 = vector.broadcast %89 : vector<16x1xf32> to vector<16x16xf32>
    %91 = arith.mulf %86, %90 : vector<16x16xf32>
    %cst_31 = arith.constant dense<0.000000e+00> : vector<16x8xf32>
    %92 = tpu.matmul %91, %77, %cst_31 {dimension_numbers = #tpu.dot_dimension_numbers<[1], [0], [0], [1], [0, 0, 1, 1], [], []>} : vector<16x16xf32>, vector<16x8xf32>, vector<16x8xf32> -> vector<16x8xf32>
    %93 = vector.extract_strided_slice %38 {offsets = [0, 24], sizes = [16, 8], strides = [1, 1]} : vector<16x96xf32> to vector<16x8xf32>
    %94 = vector.extract_strided_slice %38 {offsets = [0, 56], sizes = [16, 8], strides = [1, 1]} : vector<16x96xf32> to vector<16x8xf32>
    %95 = vector.extract_strided_slice %38 {offsets = [0, 88], sizes = [16, 8], strides = [1, 1]} : vector<16x96xf32> to vector<16x8xf32>
    %cst_32 = arith.constant dense<0.000000e+00> : vector<16x16xf32>
    %96 = tpu.matmul %93, %94, %cst_32 {dimension_numbers = #tpu.dot_dimension_numbers<[1], [1], [0], [0], [0, 0, 1, 0], [], []>} : vector<16x8xf32>, vector<16x8xf32>, vector<16x16xf32> -> vector<16x16xf32>
    %cst_33 = arith.constant 0.353553385 : f32
    %97 = vector.broadcast %cst_33 : f32 to vector<16x16xf32>
    %98 = arith.mulf %96, %97 : vector<16x16xf32>
    %99 = arith.addf %98, %1 : vector<16x16xf32>
    %cst_34 = arith.constant dense<0xFF800000> : vector<16xf32>
    %100 = vector.multi_reduction <maximumf>, %99, %cst_34 [1] : vector<16x16xf32> to vector<16xf32>
    %101 = vector.shape_cast %100 : vector<16xf32> to vector<16x1xf32>
    %102 = vector.broadcast %101 : vector<16x1xf32> to vector<16x16xf32>
    %103 = arith.subf %99, %102 : vector<16x16xf32>
    %104 = math.exp %103 : vector<16x16xf32>
    %cst_35 = arith.constant dense<0.000000e+00> : vector<16xf32>
    %105 = vector.multi_reduction <add>, %104, %cst_35 [1] : vector<16x16xf32> to vector<16xf32>
    %106 = vector.shape_cast %105 : vector<16xf32> to vector<16x1xf32>
    %107 = tpu.reciprocal %106 {approx = true} : vector<16x1xf32> -> vector<16x1xf32>
    %108 = vector.broadcast %107 : vector<16x1xf32> to vector<16x16xf32>
    %109 = arith.mulf %104, %108 : vector<16x16xf32>
    %cst_36 = arith.constant dense<0.000000e+00> : vector<16x8xf32>
    %110 = tpu.matmul %109, %95, %cst_36 {dimension_numbers = #tpu.dot_dimension_numbers<[1], [0], [0], [1], [0, 0, 1, 1], [], []>} : vector<16x16xf32>, vector<16x8xf32>, vector<16x8xf32> -> vector<16x8xf32>
    %111 = tpu.concatenate %56, %74, %92, %110 in 1 : vector<16x8xf32>, vector<16x8xf32>, vector<16x8xf32>, vector<16x8xf32> -> vector<16x32xf32>
    %c0_37 = arith.constant 0 : index
    %c0_38 = arith.constant 0 : index
    %c0_39 = arith.constant 0 : index
    %112 = vector.load %arg4[%c0_37, %c0_38, %c0_39] : memref<2x32x32xf32, #tpu.memory_space<vmem>>, vector<1x32x32xf32>
    %113 = vector.shape_cast %112 : vector<1x32x32xf32> to vector<32x32xf32>
    %cst_40 = arith.constant dense<0.000000e+00> : vector<16x32xf32>
    %114 = tpu.matmul %111, %113, %cst_40 {dimension_numbers = #tpu.dot_dimension_numbers<[1], [0], [0], [1], [0, 0, 1, 1], [], []>} : vector<16x32xf32>, vector<32x32xf32>, vector<16x32xf32> -> vector<16x32xf32>
    %115 = arith.addf %0, %114 : vector<16x32xf32>
    %116 = vector.broadcast %6 : vector<1x32xf32> to vector<16x32xf32>
    %117 = arith.addf %115, %116 : vector<16x32xf32>
    %cst_41 = arith.constant dense<0.000000e+00> : vector<16xf32>
    %118 = vector.multi_reduction <add>, %117, %cst_41 [1] : vector<16x32xf32> to vector<16xf32>
    %119 = vector.shape_cast %118 : vector<16xf32> to vector<16x1xf32>
    %cst_42 = arith.constant 3.200000e+01 : f32
    %120 = vector.broadcast %cst_42 : f32 to vector<16x1xf32>
    %121 = arith.divf %119, %120 : vector<16x1xf32>
    %122 = vector.broadcast %121 : vector<16x1xf32> to vector<16x32xf32>
    %123 = arith.subf %117, %122 : vector<16x32xf32>
    %124 = arith.mulf %123, %123 : vector<16x32xf32>
    %cst_43 = arith.constant dense<0.000000e+00> : vector<16xf32>
    %125 = vector.multi_reduction <add>, %124, %cst_43 [1] : vector<16x32xf32> to vector<16xf32>
    %126 = vector.shape_cast %125 : vector<16xf32> to vector<16x1xf32>
    %cst_44 = arith.constant 0.0322580636 : f32
    %127 = vector.broadcast %cst_44 : f32 to vector<16x1xf32>
    %128 = arith.mulf %126, %127 : vector<16x1xf32>
    %cst_45 = arith.constant 9.99999996E-13 : f32
    %129 = vector.broadcast %cst_45 : f32 to vector<16x1xf32>
    %130 = arith.addf %128, %129 : vector<16x1xf32>
    %131 = math.rsqrt %130 : vector<16x1xf32>
    %132 = vector.broadcast %121 : vector<16x1xf32> to vector<16x32xf32>
    %133 = arith.subf %117, %132 : vector<16x32xf32>
    %134 = vector.broadcast %7 : vector<1x32xf32> to vector<16x32xf32>
    %135 = arith.mulf %134, %133 : vector<16x32xf32>
    %136 = vector.broadcast %131 : vector<16x1xf32> to vector<16x32xf32>
    %137 = arith.mulf %135, %136 : vector<16x32xf32>
    %138 = vector.broadcast %8 : vector<1x32xf32> to vector<16x32xf32>
    %139 = arith.addf %137, %138 : vector<16x32xf32>
    %c0_46 = arith.constant 0 : index
    %c0_47 = arith.constant 0 : index
    %c0_48 = arith.constant 0 : index
    %140 = vector.load %arg5[%c0_46, %c0_47, %c0_48] : memref<2x32x64xf32, #tpu.memory_space<vmem>>, vector<1x32x64xf32>
    %141 = vector.shape_cast %140 : vector<1x32x64xf32> to vector<32x64xf32>
    %cst_49 = arith.constant dense<0.000000e+00> : vector<16x64xf32>
    %142 = tpu.matmul %139, %141, %cst_49 {dimension_numbers = #tpu.dot_dimension_numbers<[1], [0], [0], [1], [0, 0, 1, 1], [], []>} : vector<16x32xf32>, vector<32x64xf32>, vector<16x64xf32> -> vector<16x64xf32>
    %c0_50 = arith.constant 0 : index
    %c0_51 = arith.constant 0 : index
    %c0_52 = arith.constant 0 : index
    %143 = vector.load %arg6[%c0_50, %c0_51, %c0_52] : memref<2x1x64xf32, #tpu.memory_space<vmem>>, vector<1x1x64xf32>
    %144 = vector.shape_cast %143 : vector<1x1x64xf32> to vector<1x64xf32>
    %145 = vector.broadcast %144 : vector<1x64xf32> to vector<16x64xf32>
    %146 = arith.addf %142, %145 : vector<16x64xf32>
    %cst_53 = arith.constant 0.000000e+00 : f32
    %147 = vector.broadcast %cst_53 : f32 to vector<16x64xf32>
    %148 = arith.maximumf %146, %147 : vector<16x64xf32>
    %c0_54 = arith.constant 0 : index
    %c0_55 = arith.constant 0 : index
    %c0_56 = arith.constant 0 : index
    %149 = vector.load %arg7[%c0_54, %c0_55, %c0_56] : memref<2x64x32xf32, #tpu.memory_space<vmem>>, vector<1x64x32xf32>
    %150 = vector.shape_cast %149 : vector<1x64x32xf32> to vector<64x32xf32>
    %cst_57 = arith.constant dense<0.000000e+00> : vector<16x32xf32>
    %151 = tpu.matmul %148, %150, %cst_57 {dimension_numbers = #tpu.dot_dimension_numbers<[1], [0], [0], [1], [0, 0, 1, 1], [], []>} : vector<16x64xf32>, vector<64x32xf32>, vector<16x32xf32> -> vector<16x32xf32>
    %152 = arith.addf %117, %151 : vector<16x32xf32>
    %153 = vector.broadcast %9 : vector<1x32xf32> to vector<16x32xf32>
    %154 = arith.addf %152, %153 : vector<16x32xf32>
    %c1 = arith.constant 1 : index
    %c0_58 = arith.constant 0 : index
    %c0_59 = arith.constant 0 : index
    %155 = vector.load %arg8[%c1, %c0_58, %c0_59] : memref<2x6x32xf32, #tpu.memory_space<vmem>>, vector<1x6x32xf32>
    %156 = vector.shape_cast %155 : vector<1x6x32xf32> to vector<6x32xf32>
    %157 = vector.extract_strided_slice %156 {offsets = [0, 0], sizes = [1, 32], strides = [1, 1]} : vector<6x32xf32> to vector<1x32xf32>
    %158 = vector.extract_strided_slice %156 {offsets = [1, 0], sizes = [1, 32], strides = [1, 1]} : vector<6x32xf32> to vector<1x32xf32>
    %159 = vector.extract_strided_slice %156 {offsets = [2, 0], sizes = [1, 32], strides = [1, 1]} : vector<6x32xf32> to vector<1x32xf32>
    %160 = vector.extract_strided_slice %156 {offsets = [3, 0], sizes = [1, 32], strides = [1, 1]} : vector<6x32xf32> to vector<1x32xf32>
    %161 = vector.extract_strided_slice %156 {offsets = [4, 0], sizes = [1, 32], strides = [1, 1]} : vector<6x32xf32> to vector<1x32xf32>
    %162 = vector.extract_strided_slice %156 {offsets = [5, 0], sizes = [1, 32], strides = [1, 1]} : vector<6x32xf32> to vector<1x32xf32>
    %cst_60 = arith.constant dense<0.000000e+00> : vector<16xf32>
    %163 = vector.multi_reduction <add>, %154, %cst_60 [1] : vector<16x32xf32> to vector<16xf32>
    %164 = vector.shape_cast %163 : vector<16xf32> to vector<16x1xf32>
    %cst_61 = arith.constant 3.200000e+01 : f32
    %165 = vector.broadcast %cst_61 : f32 to vector<16x1xf32>
    %166 = arith.divf %164, %165 : vector<16x1xf32>
    %167 = vector.broadcast %166 : vector<16x1xf32> to vector<16x32xf32>
    %168 = arith.subf %154, %167 : vector<16x32xf32>
    %169 = arith.mulf %168, %168 : vector<16x32xf32>
    %cst_62 = arith.constant dense<0.000000e+00> : vector<16xf32>
    %170 = vector.multi_reduction <add>, %169, %cst_62 [1] : vector<16x32xf32> to vector<16xf32>
    %171 = vector.shape_cast %170 : vector<16xf32> to vector<16x1xf32>
    %cst_63 = arith.constant 0.0322580636 : f32
    %172 = vector.broadcast %cst_63 : f32 to vector<16x1xf32>
    %173 = arith.mulf %171, %172 : vector<16x1xf32>
    %cst_64 = arith.constant 9.99999996E-13 : f32
    %174 = vector.broadcast %cst_64 : f32 to vector<16x1xf32>
    %175 = arith.addf %173, %174 : vector<16x1xf32>
    %176 = math.rsqrt %175 : vector<16x1xf32>
    %177 = vector.broadcast %166 : vector<16x1xf32> to vector<16x32xf32>
    %178 = arith.subf %154, %177 : vector<16x32xf32>
    %179 = vector.broadcast %157 : vector<1x32xf32> to vector<16x32xf32>
    %180 = arith.mulf %179, %178 : vector<16x32xf32>
    %181 = vector.broadcast %176 : vector<16x1xf32> to vector<16x32xf32>
    %182 = arith.mulf %180, %181 : vector<16x32xf32>
    %183 = vector.broadcast %158 : vector<1x32xf32> to vector<16x32xf32>
    %184 = arith.addf %182, %183 : vector<16x32xf32>
    %c1_65 = arith.constant 1 : index
    %c0_66 = arith.constant 0 : index
    %c0_67 = arith.constant 0 : index
    %185 = vector.load %arg2[%c1_65, %c0_66, %c0_67] : memref<2x32x96xf32, #tpu.memory_space<vmem>>, vector<1x32x96xf32>
    %186 = vector.shape_cast %185 : vector<1x32x96xf32> to vector<32x96xf32>
    %cst_68 = arith.constant dense<0.000000e+00> : vector<16x96xf32>
    %187 = tpu.matmul %184, %186, %cst_68 {dimension_numbers = #tpu.dot_dimension_numbers<[1], [0], [0], [1], [0, 0, 1, 1], [], []>} : vector<16x32xf32>, vector<32x96xf32>, vector<16x96xf32> -> vector<16x96xf32>
    %c1_69 = arith.constant 1 : index
    %c0_70 = arith.constant 0 : index
    %c0_71 = arith.constant 0 : index
    %188 = vector.load %arg3[%c1_69, %c0_70, %c0_71] : memref<2x1x96xf32, #tpu.memory_space<vmem>>, vector<1x1x96xf32>
    %189 = vector.shape_cast %188 : vector<1x1x96xf32> to vector<1x96xf32>
    %190 = vector.broadcast %189 : vector<1x96xf32> to vector<16x96xf32>
    %191 = arith.addf %187, %190 : vector<16x96xf32>
    %192 = vector.extract_strided_slice %191 {offsets = [0, 0], sizes = [16, 8], strides = [1, 1]} : vector<16x96xf32> to vector<16x8xf32>
    %193 = vector.extract_strided_slice %191 {offsets = [0, 32], sizes = [16, 8], strides = [1, 1]} : vector<16x96xf32> to vector<16x8xf32>
    %194 = vector.extract_strided_slice %191 {offsets = [0, 64], sizes = [16, 8], strides = [1, 1]} : vector<16x96xf32> to vector<16x8xf32>
    %cst_72 = arith.constant dense<0.000000e+00> : vector<16x16xf32>
    %195 = tpu.matmul %192, %193, %cst_72 {dimension_numbers = #tpu.dot_dimension_numbers<[1], [1], [0], [0], [0, 0, 1, 0], [], []>} : vector<16x8xf32>, vector<16x8xf32>, vector<16x16xf32> -> vector<16x16xf32>
    %cst_73 = arith.constant 0.353553385 : f32
    %196 = vector.broadcast %cst_73 : f32 to vector<16x16xf32>
    %197 = arith.mulf %195, %196 : vector<16x16xf32>
    %198 = arith.addf %197, %1 : vector<16x16xf32>
    %cst_74 = arith.constant dense<0xFF800000> : vector<16xf32>
    %199 = vector.multi_reduction <maximumf>, %198, %cst_74 [1] : vector<16x16xf32> to vector<16xf32>
    %200 = vector.shape_cast %199 : vector<16xf32> to vector<16x1xf32>
    %201 = vector.broadcast %200 : vector<16x1xf32> to vector<16x16xf32>
    %202 = arith.subf %198, %201 : vector<16x16xf32>
    %203 = math.exp %202 : vector<16x16xf32>
    %cst_75 = arith.constant dense<0.000000e+00> : vector<16xf32>
    %204 = vector.multi_reduction <add>, %203, %cst_75 [1] : vector<16x16xf32> to vector<16xf32>
    %205 = vector.shape_cast %204 : vector<16xf32> to vector<16x1xf32>
    %206 = tpu.reciprocal %205 {approx = true} : vector<16x1xf32> -> vector<16x1xf32>
    %207 = vector.broadcast %206 : vector<16x1xf32> to vector<16x16xf32>
    %208 = arith.mulf %203, %207 : vector<16x16xf32>
    %cst_76 = arith.constant dense<0.000000e+00> : vector<16x8xf32>
    %209 = tpu.matmul %208, %194, %cst_76 {dimension_numbers = #tpu.dot_dimension_numbers<[1], [0], [0], [1], [0, 0, 1, 1], [], []>} : vector<16x16xf32>, vector<16x8xf32>, vector<16x8xf32> -> vector<16x8xf32>
    %210 = vector.extract_strided_slice %191 {offsets = [0, 8], sizes = [16, 8], strides = [1, 1]} : vector<16x96xf32> to vector<16x8xf32>
    %211 = vector.extract_strided_slice %191 {offsets = [0, 40], sizes = [16, 8], strides = [1, 1]} : vector<16x96xf32> to vector<16x8xf32>
    %212 = vector.extract_strided_slice %191 {offsets = [0, 72], sizes = [16, 8], strides = [1, 1]} : vector<16x96xf32> to vector<16x8xf32>
    %cst_77 = arith.constant dense<0.000000e+00> : vector<16x16xf32>
    %213 = tpu.matmul %210, %211, %cst_77 {dimension_numbers = #tpu.dot_dimension_numbers<[1], [1], [0], [0], [0, 0, 1, 0], [], []>} : vector<16x8xf32>, vector<16x8xf32>, vector<16x16xf32> -> vector<16x16xf32>
    %cst_78 = arith.constant 0.353553385 : f32
    %214 = vector.broadcast %cst_78 : f32 to vector<16x16xf32>
    %215 = arith.mulf %213, %214 : vector<16x16xf32>
    %216 = arith.addf %215, %1 : vector<16x16xf32>
    %cst_79 = arith.constant dense<0xFF800000> : vector<16xf32>
    %217 = vector.multi_reduction <maximumf>, %216, %cst_79 [1] : vector<16x16xf32> to vector<16xf32>
    %218 = vector.shape_cast %217 : vector<16xf32> to vector<16x1xf32>
    %219 = vector.broadcast %218 : vector<16x1xf32> to vector<16x16xf32>
    %220 = arith.subf %216, %219 : vector<16x16xf32>
    %221 = math.exp %220 : vector<16x16xf32>
    %cst_80 = arith.constant dense<0.000000e+00> : vector<16xf32>
    %222 = vector.multi_reduction <add>, %221, %cst_80 [1] : vector<16x16xf32> to vector<16xf32>
    %223 = vector.shape_cast %222 : vector<16xf32> to vector<16x1xf32>
    %224 = tpu.reciprocal %223 {approx = true} : vector<16x1xf32> -> vector<16x1xf32>
    %225 = vector.broadcast %224 : vector<16x1xf32> to vector<16x16xf32>
    %226 = arith.mulf %221, %225 : vector<16x16xf32>
    %cst_81 = arith.constant dense<0.000000e+00> : vector<16x8xf32>
    %227 = tpu.matmul %226, %212, %cst_81 {dimension_numbers = #tpu.dot_dimension_numbers<[1], [0], [0], [1], [0, 0, 1, 1], [], []>} : vector<16x16xf32>, vector<16x8xf32>, vector<16x8xf32> -> vector<16x8xf32>
    %228 = vector.extract_strided_slice %191 {offsets = [0, 16], sizes = [16, 8], strides = [1, 1]} : vector<16x96xf32> to vector<16x8xf32>
    %229 = vector.extract_strided_slice %191 {offsets = [0, 48], sizes = [16, 8], strides = [1, 1]} : vector<16x96xf32> to vector<16x8xf32>
    %230 = vector.extract_strided_slice %191 {offsets = [0, 80], sizes = [16, 8], strides = [1, 1]} : vector<16x96xf32> to vector<16x8xf32>
    %cst_82 = arith.constant dense<0.000000e+00> : vector<16x16xf32>
    %231 = tpu.matmul %228, %229, %cst_82 {dimension_numbers = #tpu.dot_dimension_numbers<[1], [1], [0], [0], [0, 0, 1, 0], [], []>} : vector<16x8xf32>, vector<16x8xf32>, vector<16x16xf32> -> vector<16x16xf32>
    %cst_83 = arith.constant 0.353553385 : f32
    %232 = vector.broadcast %cst_83 : f32 to vector<16x16xf32>
    %233 = arith.mulf %231, %232 : vector<16x16xf32>
    %234 = arith.addf %233, %1 : vector<16x16xf32>
    %cst_84 = arith.constant dense<0xFF800000> : vector<16xf32>
    %235 = vector.multi_reduction <maximumf>, %234, %cst_84 [1] : vector<16x16xf32> to vector<16xf32>
    %236 = vector.shape_cast %235 : vector<16xf32> to vector<16x1xf32>
    %237 = vector.broadcast %236 : vector<16x1xf32> to vector<16x16xf32>
    %238 = arith.subf %234, %237 : vector<16x16xf32>
    %239 = math.exp %238 : vector<16x16xf32>
    %cst_85 = arith.constant dense<0.000000e+00> : vector<16xf32>
    %240 = vector.multi_reduction <add>, %239, %cst_85 [1] : vector<16x16xf32> to vector<16xf32>
    %241 = vector.shape_cast %240 : vector<16xf32> to vector<16x1xf32>
    %242 = tpu.reciprocal %241 {approx = true} : vector<16x1xf32> -> vector<16x1xf32>
    %243 = vector.broadcast %242 : vector<16x1xf32> to vector<16x16xf32>
    %244 = arith.mulf %239, %243 : vector<16x16xf32>
    %cst_86 = arith.constant dense<0.000000e+00> : vector<16x8xf32>
    %245 = tpu.matmul %244, %230, %cst_86 {dimension_numbers = #tpu.dot_dimension_numbers<[1], [0], [0], [1], [0, 0, 1, 1], [], []>} : vector<16x16xf32>, vector<16x8xf32>, vector<16x8xf32> -> vector<16x8xf32>
    %246 = vector.extract_strided_slice %191 {offsets = [0, 24], sizes = [16, 8], strides = [1, 1]} : vector<16x96xf32> to vector<16x8xf32>
    %247 = vector.extract_strided_slice %191 {offsets = [0, 56], sizes = [16, 8], strides = [1, 1]} : vector<16x96xf32> to vector<16x8xf32>
    %248 = vector.extract_strided_slice %191 {offsets = [0, 88], sizes = [16, 8], strides = [1, 1]} : vector<16x96xf32> to vector<16x8xf32>
    %cst_87 = arith.constant dense<0.000000e+00> : vector<16x16xf32>
    %249 = tpu.matmul %246, %247, %cst_87 {dimension_numbers = #tpu.dot_dimension_numbers<[1], [1], [0], [0], [0, 0, 1, 0], [], []>} : vector<16x8xf32>, vector<16x8xf32>, vector<16x16xf32> -> vector<16x16xf32>
    %cst_88 = arith.constant 0.353553385 : f32
    %250 = vector.broadcast %cst_88 : f32 to vector<16x16xf32>
    %251 = arith.mulf %249, %250 : vector<16x16xf32>
    %252 = arith.addf %251, %1 : vector<16x16xf32>
    %cst_89 = arith.constant dense<0xFF800000> : vector<16xf32>
    %253 = vector.multi_reduction <maximumf>, %252, %cst_89 [1] : vector<16x16xf32> to vector<16xf32>
    %254 = vector.shape_cast %253 : vector<16xf32> to vector<16x1xf32>
    %255 = vector.broadcast %254 : vector<16x1xf32> to vector<16x16xf32>
    %256 = arith.subf %252, %255 : vector<16x16xf32>
    %257 = math.exp %256 : vector<16x16xf32>
    %cst_90 = arith.constant dense<0.000000e+00> : vector<16xf32>
    %258 = vector.multi_reduction <add>, %257, %cst_90 [1] : vector<16x16xf32> to vector<16xf32>
    %259 = vector.shape_cast %258 : vector<16xf32> to vector<16x1xf32>
    %260 = tpu.reciprocal %259 {approx = true} : vector<16x1xf32> -> vector<16x1xf32>
    %261 = vector.broadcast %260 : vector<16x1xf32> to vector<16x16xf32>
    %262 = arith.mulf %257, %261 : vector<16x16xf32>
    %cst_91 = arith.constant dense<0.000000e+00> : vector<16x8xf32>
    %263 = tpu.matmul %262, %248, %cst_91 {dimension_numbers = #tpu.dot_dimension_numbers<[1], [0], [0], [1], [0, 0, 1, 1], [], []>} : vector<16x16xf32>, vector<16x8xf32>, vector<16x8xf32> -> vector<16x8xf32>
    %264 = tpu.concatenate %209, %227, %245, %263 in 1 : vector<16x8xf32>, vector<16x8xf32>, vector<16x8xf32>, vector<16x8xf32> -> vector<16x32xf32>
    %c1_92 = arith.constant 1 : index
    %c0_93 = arith.constant 0 : index
    %c0_94 = arith.constant 0 : index
    %265 = vector.load %arg4[%c1_92, %c0_93, %c0_94] : memref<2x32x32xf32, #tpu.memory_space<vmem>>, vector<1x32x32xf32>
    %266 = vector.shape_cast %265 : vector<1x32x32xf32> to vector<32x32xf32>
    %cst_95 = arith.constant dense<0.000000e+00> : vector<16x32xf32>
    %267 = tpu.matmul %264, %266, %cst_95 {dimension_numbers = #tpu.dot_dimension_numbers<[1], [0], [0], [1], [0, 0, 1, 1], [], []>} : vector<16x32xf32>, vector<32x32xf32>, vector<16x32xf32> -> vector<16x32xf32>
    %268 = arith.addf %154, %267 : vector<16x32xf32>
    %269 = vector.broadcast %159 : vector<1x32xf32> to vector<16x32xf32>
    %270 = arith.addf %268, %269 : vector<16x32xf32>
    %cst_96 = arith.constant dense<0.000000e+00> : vector<16xf32>
    %271 = vector.multi_reduction <add>, %270, %cst_96 [1] : vector<16x32xf32> to vector<16xf32>
    %272 = vector.shape_cast %271 : vector<16xf32> to vector<16x1xf32>
    %cst_97 = arith.constant 3.200000e+01 : f32
    %273 = vector.broadcast %cst_97 : f32 to vector<16x1xf32>
    %274 = arith.divf %272, %273 : vector<16x1xf32>
    %275 = vector.broadcast %274 : vector<16x1xf32> to vector<16x32xf32>
    %276 = arith.subf %270, %275 : vector<16x32xf32>
    %277 = arith.mulf %276, %276 : vector<16x32xf32>
    %cst_98 = arith.constant dense<0.000000e+00> : vector<16xf32>
    %278 = vector.multi_reduction <add>, %277, %cst_98 [1] : vector<16x32xf32> to vector<16xf32>
    %279 = vector.shape_cast %278 : vector<16xf32> to vector<16x1xf32>
    %cst_99 = arith.constant 0.0322580636 : f32
    %280 = vector.broadcast %cst_99 : f32 to vector<16x1xf32>
    %281 = arith.mulf %279, %280 : vector<16x1xf32>
    %cst_100 = arith.constant 9.99999996E-13 : f32
    %282 = vector.broadcast %cst_100 : f32 to vector<16x1xf32>
    %283 = arith.addf %281, %282 : vector<16x1xf32>
    %284 = math.rsqrt %283 : vector<16x1xf32>
    %285 = vector.broadcast %274 : vector<16x1xf32> to vector<16x32xf32>
    %286 = arith.subf %270, %285 : vector<16x32xf32>
    %287 = vector.broadcast %160 : vector<1x32xf32> to vector<16x32xf32>
    %288 = arith.mulf %287, %286 : vector<16x32xf32>
    %289 = vector.broadcast %284 : vector<16x1xf32> to vector<16x32xf32>
    %290 = arith.mulf %288, %289 : vector<16x32xf32>
    %291 = vector.broadcast %161 : vector<1x32xf32> to vector<16x32xf32>
    %292 = arith.addf %290, %291 : vector<16x32xf32>
    %c1_101 = arith.constant 1 : index
    %c0_102 = arith.constant 0 : index
    %c0_103 = arith.constant 0 : index
    %293 = vector.load %arg5[%c1_101, %c0_102, %c0_103] : memref<2x32x64xf32, #tpu.memory_space<vmem>>, vector<1x32x64xf32>
    %294 = vector.shape_cast %293 : vector<1x32x64xf32> to vector<32x64xf32>
    %cst_104 = arith.constant dense<0.000000e+00> : vector<16x64xf32>
    %295 = tpu.matmul %292, %294, %cst_104 {dimension_numbers = #tpu.dot_dimension_numbers<[1], [0], [0], [1], [0, 0, 1, 1], [], []>} : vector<16x32xf32>, vector<32x64xf32>, vector<16x64xf32> -> vector<16x64xf32>
    %c1_105 = arith.constant 1 : index
    %c0_106 = arith.constant 0 : index
    %c0_107 = arith.constant 0 : index
    %296 = vector.load %arg6[%c1_105, %c0_106, %c0_107] : memref<2x1x64xf32, #tpu.memory_space<vmem>>, vector<1x1x64xf32>
    %297 = vector.shape_cast %296 : vector<1x1x64xf32> to vector<1x64xf32>
    %298 = vector.broadcast %297 : vector<1x64xf32> to vector<16x64xf32>
    %299 = arith.addf %295, %298 : vector<16x64xf32>
    %cst_108 = arith.constant 0.000000e+00 : f32
    %300 = vector.broadcast %cst_108 : f32 to vector<16x64xf32>
    %301 = arith.maximumf %299, %300 : vector<16x64xf32>
    %c1_109 = arith.constant 1 : index
    %c0_110 = arith.constant 0 : index
    %c0_111 = arith.constant 0 : index
    %302 = vector.load %arg7[%c1_109, %c0_110, %c0_111] : memref<2x64x32xf32, #tpu.memory_space<vmem>>, vector<1x64x32xf32>
    %303 = vector.shape_cast %302 : vector<1x64x32xf32> to vector<64x32xf32>
    %cst_112 = arith.constant dense<0.000000e+00> : vector<16x32xf32>
    %304 = tpu.matmul %301, %303, %cst_112 {dimension_numbers = #tpu.dot_dimension_numbers<[1], [0], [0], [1], [0, 0, 1, 1], [], []>} : vector<16x64xf32>, vector<64x32xf32>, vector<16x32xf32> -> vector<16x32xf32>
    %305 = arith.addf %270, %304 : vector<16x32xf32>
    %306 = vector.broadcast %162 : vector<1x32xf32> to vector<16x32xf32>
    %307 = arith.addf %305, %306 : vector<16x32xf32>
    %c0_113 = arith.constant 0 : index
    %c0_114 = arith.constant 0 : index
    %308 = vector.load %arg9[%c0_113, %c0_114] : memref<2x32xf32, #tpu.memory_space<vmem>>, vector<2x32xf32>
    %309 = vector.extract_strided_slice %308 {offsets = [0, 0], sizes = [1, 32], strides = [1, 1]} : vector<2x32xf32> to vector<1x32xf32>
    %310 = vector.extract_strided_slice %308 {offsets = [1, 0], sizes = [1, 32], strides = [1, 1]} : vector<2x32xf32> to vector<1x32xf32>
    %cst_115 = arith.constant dense<0.000000e+00> : vector<16xf32>
    %311 = vector.multi_reduction <add>, %307, %cst_115 [1] : vector<16x32xf32> to vector<16xf32>
    %312 = vector.shape_cast %311 : vector<16xf32> to vector<16x1xf32>
    %cst_116 = arith.constant 3.200000e+01 : f32
    %313 = vector.broadcast %cst_116 : f32 to vector<16x1xf32>
    %314 = arith.divf %312, %313 : vector<16x1xf32>
    %315 = vector.broadcast %314 : vector<16x1xf32> to vector<16x32xf32>
    %316 = arith.subf %307, %315 : vector<16x32xf32>
    %317 = arith.mulf %316, %316 : vector<16x32xf32>
    %cst_117 = arith.constant dense<0.000000e+00> : vector<16xf32>
    %318 = vector.multi_reduction <add>, %317, %cst_117 [1] : vector<16x32xf32> to vector<16xf32>
    %319 = vector.shape_cast %318 : vector<16xf32> to vector<16x1xf32>
    %cst_118 = arith.constant 0.0322580636 : f32
    %320 = vector.broadcast %cst_118 : f32 to vector<16x1xf32>
    %321 = arith.mulf %319, %320 : vector<16x1xf32>
    %cst_119 = arith.constant 9.99999996E-13 : f32
    %322 = vector.broadcast %cst_119 : f32 to vector<16x1xf32>
    %323 = arith.addf %321, %322 : vector<16x1xf32>
    %324 = math.rsqrt %323 : vector<16x1xf32>
    %325 = vector.broadcast %314 : vector<16x1xf32> to vector<16x32xf32>
    %326 = arith.subf %307, %325 : vector<16x32xf32>
    %327 = vector.broadcast %309 : vector<1x32xf32> to vector<16x32xf32>
    %328 = arith.mulf %327, %326 : vector<16x32xf32>
    %329 = vector.broadcast %324 : vector<16x1xf32> to vector<16x32xf32>
    %330 = arith.mulf %328, %329 : vector<16x32xf32>
    %331 = vector.broadcast %310 : vector<1x32xf32> to vector<16x32xf32>
    %332 = arith.addf %330, %331 : vector<16x32xf32>
    %c0_120 = arith.constant 0 : index
    %c0_121 = arith.constant 0 : index
    %333 = vector.load %arg10[%c0_120, %c0_121] : memref<16x32xf32, #tpu.memory_space<vmem>>, vector<16x32xf32>
    tpu.vector_store %arg10[%c0_120, %c0_121], %332 {strides = array<i32>} : memref<16x32xf32, #tpu.memory_space<vmem>>, vector<16x32xf32>,
    return
  }
}

</mosaic_0001>

<bundles_post_ra>
// kernel: tpu_custom_call.1
= control target key start
LH: loop header
LB: loop body
LE: loop exit
PB: predicated region body
PF: predicated region fallthrough
CT: control target
= control target key end

     0   :  { %15 = vsyncpa [#allocation3], 0  ;;  %s2388_s0 = inlined_call_operand.vmem [shape: f32[16,32], index: 0, kind: input, shape index: {}]   ;;  %s2389_s1 = inlined_call_operand.hbm [shape: f32[16,16], index: 1, kind: input, shape index: {}]   ;;  %s2390_s2 = inlined_call_operand.vmem [shape: f32[2,32,96], index: 2, kind: input, shape index: {}]   ;;  %s2391_s3 = inlined_call_operand.vmem [shape: f32[2,1,96], index: 3, kind: input, shape index: {}]   ;;  %s2392_s4 = inlined_call_operand.vmem [shape: f32[2,32,32], index: 4, kind: input, shape index: {}]   ;;  %s2393_s5 = inlined_call_operand.vmem [shape: f32[2,32,64], index: 5, kind: input, shape index: {}]   ;;  %s2394_s6 = inlined_call_operand.vmem [shape: f32[2,1,64], index: 6, kind: input, shape index: {}]   ;;  %s2395_s7 = inlined_call_operand.vmem [shape: f32[2,64,32], index: 7, kind: input, shape index: {}]   ;;  %s2396_s8 = inlined_call_operand.vmem [shape: f32[2,6,32], index: 8, kind: input, shape index: {}]   ;;  %s2397_s9 = inlined_call_operand.vmem [shape: f32[2,32], index: 9, kind: input, shape index: {}]   ;;  %s2398_s10 = inlined_call_operand.hbm [shape: f32[16,32], index: 10, kind: output, shape index: {}]  }
   0x1   :  { %16 = vsyncpa [#allocation4], 0  ;;  %s23_s15 = sshll.u32 %s2389_s1, 4  ;;  %s1804_s16 = smov [#allocation2]   ;;  %s24_s15 = int_to_ptr.hbm [resolvable:$true] %s23_s15 }
   0x2   :  { %s25_s17 = sshll.u32 %s1804_s16, 4  ;;  %s2399_s18 = smov 128   ;;  %s26_s17 = int_to_ptr.vmem [resolvable:$true] %s25_s17 }
   0x3   :  { %s1806_s19 = smov 8  }
   0x4   :  { %31 = dma.hbm_to_vmem [thread:$0]  %s24_s15, 256, %s26_s17, [#allocation3], %s2399_s18, %s2399_s18, %s1806_s19  }
   0x5   :  { %1800 = dma.done.wait [#allocation3], 256  }
   0x6   :  { %1801 = vsyncadd [#allocation3], 4294967040  ;;  %vm57_vm0 = vcmask 261120   ;;  %v1886_v0 = vld [vmem:[%s2388_s0] sm:$0xff]  ;;  %v1893_v2 = vld [vmem:[%s2388_s0 + $0x8] sm:$0xff]  ;;  %v1807_v4 = vmov 32.0  }
   0x7   :  { %v58_v1 = vsel %vm57_vm0, %v1886_v0, 0.0  ;;  %v61_v3 = vsel %vm57_vm0, %v1893_v2, 0.0  ;;  %1666 = vrcp.f32 %v1807_v4  ;;  %v118_v21 = vld [vmem:[%s2390_s2 + $0x18] sm:$0xff]  ;;  %v117_v22 = vld [vmem:[%s2390_s2 + $0x10] sm:$0xff]  ;;  %v116_v23 = vld [vmem:[%s2390_s2 + $0x8] sm:$0xff]  ;;  %s1808_s14 = smov 88  }
   0x8   :  { %59 = vadd.xlane.f32.xlu0 %v58_v1  ;;  %141 = vmatpush.msra.mxu0 %v118_v21  ;;  %v115_v24 = vld [vmem:[%s2390_s2] sm:$0xff]  ;;  %s1809_s15 = smov 80   ;;  %s1810_s16 = smov 96   ;;  %vm158_vm8 = vcmask 64512   ;;  %vm194_vm9 = vcmask 130048   ;;  %vm580_vm10 = vcmask 195584  }
   0x9   :  { %v1920_v33 = vld [vmem:[%s2396_s8] sm:$0x3f]  ;;  %s1811_s17 = smov 112   ;;  %s1812_s20 = smov 72  }
   0xa   :  { %142 = vmatpush.msra.mxu0 %v117_v22  ;;  %v107_v36 = vperm.slane %v1920_v33, 0  ;;  %v112_v42 = vperm.slane %v1920_v33, 1  ;;  %v1662_v54 = vld [vmem:[%s2391_s3] ss:$0 sm:$0xff]  ;;  %s1813_s21 = smov 120   ;;  %s1814_s1 = smov 104  }
   0xb   :  { %s1815_s22 = smov 64   ;;  %s1816_s0 = smov 56  }
   0xc   :  { %143 = vmatpush.msra.mxu0 %v116_v23  ;;  %s1817_s23 = smov 40   ;;  %s1818_s24 = smov 48  }
   0xd   :  { %v1667_v5 = vpop.eup %1666  ;;  %s1819_s25 = smov 24   ;;  %s2400_s26 = smov 16  }
   0xe   :  { %v65_v6 = vmul.f32 32.0, %v1667_v5  ;;  %vm69_vm1 = vweird.f32 %v1667_v5  ;;  %144 = vmatpush.msra.mxu0 %v115_v24 }
  0x10   :  { %62 = vadd.xlane.f32.xlu0 %v61_v3  ;;  %v66_v7 = vsub.f32 1.0, %v65_v6 }
  0x12   :  { %v67_v8 = vmul.f32 %v1667_v5, %v66_v7 }
  0x14   :  { %v68_v9 = vadd.f32 %v1667_v5, %v67_v8 }
  0x16   :  { %v1897_v10 = vsel %vm69_vm1, %v1667_v5, %v68_v9 }
  0x7b   :  { %v60_v11 = vpop.xlane.xlu0 %59 }
  0x7c   :  { %v71_v12 = vmul.f32 %v1897_v10, %v60_v11 }
  0x7e   :  { %v73_v13 = vsub.f32 %v1886_v0, %v71_v12 }
  0x80   :  { %v75_v14 = vmul.f32 %v73_v13, %v73_v13  ;;  %v108_v41 = vmul.f32 %v107_v36, %v73_v13  ;;  %v1979_v13 = vld [vmem:[#allocation2] sm:$0xff] }
  0x82   :  { %v77_v15 = vsel %vm57_vm0, %v75_v14, 0.0 }
  0x83   :  { %78 = vadd.xlane.f32.xlu1 %v77_v15  ;;  %v63_v16 = vpop.xlane.xlu0 %62 }
  0x84   :  { %v72_v17 = vmul.f32 %v1897_v10, %v63_v16 }
  0x86   :  { %v74_v18 = vsub.f32 %v1893_v2, %v72_v17 }
  0x88   :  { %v76_v19 = vmul.f32 %v74_v18, %v74_v18  ;;  %v109_v50 = vmul.f32 %v107_v36, %v74_v18  ;;  %v1983_v18 = vld [vmem:[#allocation2 + $0x8] sm:$0xff] }
  0x8a   :  { %v80_v20 = vsel %vm57_vm0, %v76_v19, 0.0 }
  0x8b   :  { %81 = vadd.xlane.f32.xlu1 %v80_v20 }
  0xf6   :  { %v79_v25 = vpop.xlane.xlu1 %78 }
  0xf7   :  { %v83_v26 = vmul.f32 0.032258064, %v79_v25 }
  0xf9   :  { %v85_v27 = vadd.f32 1e-12, %v83_v26 }
  0xfb   :  { %1668 = vrsqrt.f32 %v85_v27  ;;  %vm93_vm3 = vweird.f32 %v85_v27 }
  0xfe   :  { %v82_v28 = vpop.xlane.xlu1 %81 }
  0xff   :  { %v84_v29 = vmul.f32 0.032258064, %v82_v28 }
 0x101   :  { %v1669_v30 = vpop.eup %1668  ;;  %v86_v31 = vadd.f32 1e-12, %v84_v29 }
 0x102   :  { %v88_v32 = vmul.f32 %v1669_v30, %v85_v27  ;;  %vm94_vm2 = vweird.f32 %v1669_v30 }
 0x103   :  { %1670 = vrsqrt.f32 %v86_v31  ;;  %vm95_vm4 = vmor %vm93_vm3, %vm94_vm2  ;;  %vm103_vm6 = vweird.f32 %v86_v31  ;;  %vm718_vm2 = vcmask 523264  }
 0x104   :  { %v89_v34 = vmul.f32 %v1669_v30, %v88_v32 }
 0x106   :  { %v90_v35 = vmul.f32 0.5, %v89_v34 }
 0x108   :  { %v91_v37 = vsub.f32 1.5, %v90_v35 }
 0x109   :  { %v1671_v38 = vpop.eup %1670 }
 0x10a   :  { %v92_v39 = vmul.f32 %v1669_v30, %v91_v37  ;;  %v98_v40 = vmul.f32 %v1671_v38, %v86_v31  ;;  %vm104_vm5 = vweird.f32 %v1671_v38 }
 0x10b   :  { %vm105_vm7 = vmor %vm103_vm6, %vm104_vm5 }
 0x10c   :  { %v99_v43 = vmul.f32 %v1671_v38, %v98_v40  ;;  %v96_v44 = vsel %vm95_vm4, %v1669_v30, %v92_v39 }
 0x10d   :  { %v110_v45 = vmul.f32 %v108_v41, %v96_v44 }
 0x10e   :  { %v100_v46 = vmul.f32 0.5, %v99_v43 }
 0x10f   :  { %v113_v47 = vadd.f32 %v112_v42, %v110_v45 }
 0x110   :  { %v101_v48 = vsub.f32 1.5, %v100_v46 }
 0x111   :  { %1517 = vmatmul.msk.f32.vlgmr.msra.gmra.mxu0 %vm57_vm0, %v113_v47 }
 0x112   :  { %v102_v49 = vmul.f32 %v1671_v38, %v101_v48 }
 0x114   :  { %v106_v51 = vsel %vm105_vm7, %v1671_v38, %v102_v49 }
 0x115   :  { %v111_v52 = vmul.f32 %v109_v50, %v106_v51 }
 0x117   :  { %v114_v53 = vadd.f32 %v112_v42, %v111_v52 }
 0x119   :  { %1518 = vmatmul.msk.f32.gmra.mxu0 %vm57_vm0, %v114_v53 }
 0x18e   :  { %v146_v55 = vpop.f32.mrf.mxu0 }
 0x18f   :  { %v1929_v56 = vadd.f32 %v1662_v54, %v146_v55 }
 0x191   :  { %256 = vrot.lane.b32.xlu1 %v1929_v56, %s1808_s14 }
 0x196   :  { %v149_v57 = vpop.f32.mrf.mxu0 }
 0x197   :  { %v1933_v58 = vadd.f32 %v1662_v54, %v149_v57 }
 0x199   :  { %358 = vrot.lane.b32.xlu1 %v1933_v58, %s1809_s15  ;;  %258 = vrot.lane.b32.xlu0 %v1933_v58, %s1808_s14  ;;  %v2007_v47 = vpack.i.bf16 %v1929_v56, %v1933_v58 }
 0x19a   :  { %156 = vrot.lane.b32.xlu2 %v1933_v58, %s1810_s16 }
 0x1a1   :  { %352 = vrot.lane.b32.xlu1 %v1929_v56, %s1811_s17  ;;  %456 = vrot.lane.b32.xlu0 %v1929_v56, %s1812_s20 }
 0x1a2   :  { %154 = vrot.lane.b32.xlu2 %v1929_v56, %s1810_s16 }
 0x1a9   :  { %356 = vrot.lane.b32.xlu0 %v1929_v56, %s1809_s15 }
 0x1aa   :  { %252 = vrot.lane.b32.xlu2 %v1929_v56, %s1813_s21 }
 0x1b1   :  { %354 = vrot.lane.b32.xlu0 %v1933_v58, %s1811_s17 }
 0x1b2   :  { %254 = vrot.lane.b32.xlu2 %v1933_v58, %s1813_s21 }
 0x1ba   :  { %458 = vrot.lane.b32.xlu2 %v1933_v58, %s1812_s20 }
 0x1c2   :  { %452 = vrot.lane.b32.xlu2 %v1929_v56, %s1814_s1 }
 0x1ca   :  { %454 = vrot.lane.b32.xlu2 %v1933_v58, %s1814_s1 }
 0x1f4   :  { %v157_v59 = vpop.permute.xlu2 %156 }
 0x1f5   :  { %1519 = vmatpush.xpose.msk.msra.mxu1 %vm158_vm8, %v157_v59 }
 0x1fc   :  { %v155_v60 = vpop.permute.xlu2 %154 }
 0x1fd   :  { %1520 = vmatpush.xpose.msk.msra.mxu1 %vm158_vm8, %v155_v60 }
 0x200   :  { %1521 = vmatmul.msk.f32.vlgmr.msra.gmra.mxu1 %vm158_vm8, %v1929_v56 }
 0x203   :  { %v257_v61 = vpop.permute.xlu1 %256 }
 0x204   :  { %v253_v62 = vpop.permute.xlu2 %252 }
 0x208   :  { %1522 = vmatmul.msk.f32.gmra.mxu1 %vm158_vm8, %v1933_v58 }
 0x20b   :  { %v259_v63 = vpop.permute.xlu0 %258  ;;  %v359_v1 = vpop.permute.xlu1 %358 }
 0x20c   :  { %v255_v3 = vpop.permute.xlu2 %254  ;;  %1525 = vmatpush.xpose.msk.msra.mxu3 %vm158_vm8, %v259_v63  ;;  %1531 = vmatpush.xpose.msk.msrb.mxu0 %vm158_vm8, %v359_v1 }
 0x210   :  { %1526 = vmatpush.xpose.msk.msra.mxu3 %vm158_vm8, %v257_v61 }
 0x213   :  { %v457_v4 = vpop.permute.xlu0 %456  ;;  %1527 = vmatmul.msk.f32.vlgmr.msra.gmra.mxu3 %vm158_vm8, %v253_v62  ;;  %v353_v7 = vpop.permute.xlu1 %352 }
 0x214   :  { %v459_v5 = vpop.permute.xlu2 %458 }
 0x215   :  { %1537 = vmatpush.xpose.msk.msrb.mxu3 %vm158_vm8, %v459_v5 }
 0x219   :  { %1538 = vmatpush.xpose.msk.msrb.mxu3 %vm158_vm8, %v457_v4 }
 0x21b   :  { %v357_v6 = vpop.permute.xlu0 %356  ;;  %1528 = vmatmul.msk.f32.gmra.mxu3 %vm158_vm8, %v255_v3 }
 0x21c   :  { %1532 = vmatpush.xpose.msk.msrb.mxu0 %vm158_vm8, %v357_v6  ;;  %v453_v8 = vpop.permute.xlu2 %452 }
 0x21f   :  { %1533 = vmatmul.msk.f32.vlgmr.msrb.gmra.mxu0 %vm158_vm8, %v353_v7 }
 0x223   :  { %1539 = vmatmul.msk.f32.vlgmr.msrb.gmra.mxu3 %vm158_vm8, %v453_v8  ;;  %v355_v9 = vpop.permute.xlu0 %354 }
 0x224   :  { %v455_v11 = vpop.permute.xlu2 %454 }
 0x227   :  { %1534 = vmatmul.msk.f32.gmra.mxu0 %vm158_vm8, %v355_v9 }
 0x22b   :  { %1540 = vmatmul.msk.f32.gmra.mxu3 %vm158_vm8, %v455_v11 }
 0x27d   :  { %v184_v12 = vpop.f32.mrf.mxu1 }
 0x27e   :  { %v190_v14 = vmul.f32 0.35355338, %v184_v12 }
 0x280   :  { %v192_v15 = vadd.f32 %v190_v14, %v1979_v13 }
 0x282   :  { %v195_v16 = vsel %vm194_vm9, %v192_v15, -inf }
 0x283   :  { %196 = vmax.xlane.f32.xlu2 %v195_v16 }
 0x285   :  { %v187_v17 = vpop.f32.mrf.mxu1 }
 0x286   :  { %v191_v19 = vmul.f32 0.35355338, %v187_v17 }
 0x288   :  { %v193_v20 = vadd.f32 %v191_v19, %v1983_v18 }
 0x28a   :  { %v198_v21 = vsel %vm194_vm9, %v193_v20, -inf }
 0x28b   :  { %199 = vmax.xlane.f32.xlu1 %v198_v21 }
 0x296   :  { %v285_v22 = vpop.f32.mrf.mxu3 }
 0x297   :  { %v291_v28 = vmul.f32 0.35355338, %v285_v22 }
 0x299   :  { %v293_v35 = vadd.f32 %v291_v28, %v1979_v13 }
 0x29b   :  { %v295_v39 = vsel %vm194_vm9, %v293_v35, -inf }
 0x29c   :  { %v385_v23 = vpop.f32.mrf.mxu0 }
 0x29d   :  { %v391_v24 = vmul.f32 0.35355338, %v385_v23 }
 0x29e   :  { %v288_v25 = vpop.f32.mrf.mxu3 }
 0x29f   :  { %v292_v26 = vmul.f32 0.35355338, %v288_v25  ;;  %v393_v27 = vadd.f32 %v391_v24, %v1979_v13 }
 0x2a1   :  { %v395_v29 = vsel %vm194_vm9, %v393_v27, -inf  ;;  %v1990_v30 = vadd.f32 %v292_v26, %v1983_v18 }
 0x2a2   :  { %396 = vmax.xlane.f32.xlu0 %v395_v29 }
 0x2a3   :  { %v298_v31 = vsel %vm194_vm9, %v1990_v30, -inf }
 0x2a4   :  { %299 = vmax.xlane.f32.xlu2 %v298_v31  ;;  %v388_v32 = vpop.f32.mrf.mxu0 }
 0x2a5   :  { %v392_v34 = vmul.f32 0.35355338, %v388_v32 }
 0x2a6   :  { %v485_v36 = vpop.f32.mrf.mxu3 }
 0x2a7   :  { %v1996_v37 = vadd.f32 %v392_v34, %v1983_v18  ;;  %v491_v38 = vmul.f32 0.35355338, %v485_v36 }
 0x2a9   :  { %v398_v40 = vsel %vm194_vm9, %v1996_v37, -inf  ;;  %v493_v41 = vadd.f32 %v491_v38, %v1979_v13 }
 0x2aa   :  { %296 = vmax.xlane.f32.xlu0 %v295_v39  ;;  %399 = vmax.xlane.f32.xlu1 %v398_v40 }
 0x2ab   :  { %v495_v44 = vsel %vm194_vm9, %v493_v41, -inf }
 0x2ae   :  { %v488_v42 = vpop.f32.mrf.mxu3 }
 0x2af   :  { %v492_v43 = vmul.f32 0.35355338, %v488_v42 }
 0x2b1   :  { %v494_v45 = vadd.f32 %v492_v43, %v1983_v18 }
 0x2b2   :  { %496 = vmax.xlane.f32.xlu1 %v495_v44 }
 0x2b3   :  { %v498_v46 = vsel %vm194_vm9, %v494_v45, -inf }
 0x2b4   :  { %499 = vmax.xlane.f32.xlu2 %v498_v46 }
 0x2cc   :  { %1623 = vrot.lane.b32.xlu2 %v2007_v47, %s1815_s22 }
 0x2f6   :  { %v197_v48 = vpop.xlane.xlu2 %196 }
 0x2f7   :  { %v201_v49 = vsub.f32 %v192_v15, %v197_v48 }
 0x2f9   :  { %v203_v50 = vmul.f32 1.442695, %v201_v49 }
 0x2fb   :  { %1672 = vpow2.f32 %v203_v50 }
 0x2fe   :  { %v200_v51 = vpop.xlane.xlu1 %199 }
 0x2ff   :  { %v202_v52 = vsub.f32 %v193_v20, %v200_v51 }
 0x301   :  { %v1673_v53 = vpop.eup %1672  ;;  %v205_v54 = vmul.f32 1.442695, %v202_v52 }
 0x302   :  { %v207_v55 = vsel %vm194_vm9, %v1673_v53, 0.0 }
 0x303   :  { %1674 = vpow2.f32 %v205_v54  ;;  %208 = vadd.xlane.f32.xlu0 %v207_v55 }
 0x309   :  { %v1675_v57 = vpop.eup %1674 }
 0x30a   :  { %v210_v56 = vsel %vm194_vm9, %v1675_v57, 0.0 }
 0x30b   :  { %211 = vadd.xlane.f32.xlu1 %v210_v56 }
 0x315   :  { %v397_v58 = vpop.xlane.xlu0 %396 }
 0x316   :  { %v401_v59 = vsub.f32 %v393_v27, %v397_v58 }
 0x317   :  { %v300_v63 = vpop.xlane.xlu2 %299 }
 0x318   :  { %v403_v60 = vmul.f32 1.442695, %v401_v59  ;;  %v302_v19 = vsub.f32 %v1990_v30, %v300_v63 }
 0x31a   :  { %1676 = vpow2.f32 %v403_v60  ;;  %v305_v20 = vmul.f32 1.442695, %v302_v19 }
 0x31d   :  { %v297_v61 = vpop.xlane.xlu0 %296  ;;  %v400_v17 = vpop.xlane.xlu1 %399 }
 0x31e   :  { %v301_v62 = vsub.f32 %v293_v35, %v297_v61  ;;  %v402_v39 = vsub.f32 %v1996_v37, %v400_v17  ;;  %v583_v17 = vld [vmem:[%s2392_s4] sm:$0xff] }
 0x320   :  { %v2013_v1 = vpop.eup %1676  ;;  %v303_v3 = vmul.f32 1.442695, %v301_v62 }
 0x321   :  { %v407_v4 = vsel %vm194_vm9, %v2013_v1, 0.0 }
 0x322   :  { %1678 = vpow2.f32 %v303_v3  ;;  %408 = vadd.xlane.f32.xlu2 %v407_v4 }
 0x324   :  { %1628 = vrot.lane.b32.xlu1 %v2007_v47, %s1816_s0 }
 0x325   :  { %v497_v21 = vpop.xlane.xlu1 %496 }
 0x326   :  { %v501_v22 = vsub.f32 %v493_v41, %v497_v21  ;;  %v405_v41 = vmul.f32 1.442695, %v402_v39 }
 0x327   :  { %v500_v5 = vpop.xlane.xlu2 %499 }
 0x328   :  { %v1679_v6 = vpop.eup %1678  ;;  %v502_v12 = vsub.f32 %v494_v45, %v500_v5  ;;  %v503_v23 = vmul.f32 1.442695, %v501_v22 }
 0x329   :  { %v307_v7 = vsel %vm194_vm9, %v1679_v6, 0.0 }
 0x32a   :  { %308 = vadd.xlane.f32.xlu0 %v307_v7  ;;  %v505_v14 = vmul.f32 1.442695, %v502_v12 }
 0x32c   :  { %1680 = vpow2.f32 %v505_v14  ;;  %v586_v14 = vld [vmem:[%s2392_s4 + $0x18] sm:$0xff] }
 0x32d   :  { %1682 = vpow2.f32 %v305_v20  ;;  %605 = vmatpush.msra.mxu0 %v586_v14  ;;  %v713_v14 = vld [vmem:[%s2395_s7 + $0x18] sm:$0xff] }
 0x32e   :  { %1684 = vpow2.f32 %v503_v23 }
 0x32f   :  { %v1624_v8 = vpop.permute.xlu2 %1623 }
 0x330   :  { %v1625_v9 = vunpack.i.l.bf16 %v1624_v8  ;;  %v1626_v11 = vunpack.i.h.bf16 %v1624_v8 }
 0x332   :  { %243 = vmatpush.msra.mxu2 %v1625_v9  ;;  %v2022_v15 = vpop.eup %1680 }
 0x333   :  { %v510_v16 = vsel %vm194_vm9, %v2022_v15, 0.0  ;;  %v1683_v24 = vpop.eup %1682 }
 0x334   :  { %244 = vmatpush.msra.mxu2 %v1626_v11  ;;  %v310_v25 = vsel %vm194_vm9, %v1683_v24, 0.0  ;;  %v1685_v26 = vpop.eup %1684 }
 0x335   :  { %v507_v27 = vsel %vm194_vm9, %v1685_v26, 0.0 }
 0x33e   :  { %1633 = vrot.lane.b32.xlu0 %v2007_v47, %s1817_s23 }
 0x34e   :  { %511 = vadd.xlane.f32.xlu1 %v510_v16  ;;  %v584_v16 = vld [vmem:[%s2392_s4 + $0x8] sm:$0xff] }
 0x368   :  { %311 = vadd.xlane.f32.xlu0 %v310_v25 }
 0x370   :  { %508 = vadd.xlane.f32.xlu0 %v507_v27 }
 0x376   :  { %v209_v28 = vpop.xlane.xlu0 %208 }
 0x377   :  { %1686 = vrcp.f32 %v209_v28 }
 0x37d   :  { %v1687_v29 = vpop.eup %1686 }
 0x37e   :  { %v212_v31 = vpop.xlane.xlu1 %211  ;;  %v215_v32 = vmul.f32 %v1687_v29, %v1673_v53 }
 0x37f   :  { %1688 = vrcp.f32 %v212_v31 }
 0x380   :  { %1523 = vmatmul.msk.f32.vlgmr.msra.gmra.mxu2 %vm194_vm9, %v215_v32  ;;  %v618_v32 = vperm.slane %v1920_v33, 2 }
 0x384   :  { %1638 = vrot.lane.b32.xlu0 %v2007_v47, %s1818_s24 }
 0x385   :  { %v1689_v30 = vpop.eup %1688 }
 0x386   :  { %v216_v34 = vmul.f32 %v1689_v30, %v1675_v57 }
 0x388   :  { %1524 = vmatmul.msk.f32.gmra.mxu2 %vm194_vm9, %v216_v34 }
 0x395   :  { %v409_v55 = vpop.xlane.xlu2 %408 }
 0x396   :  { %v1629_v35 = vpop.permute.xlu1 %1628 }
 0x397   :  { %v1630_v36 = vunpack.i.l.bf16 %v1629_v35  ;;  %v1631_v38 = vunpack.i.h.bf16 %v1629_v35 }
 0x399   :  { %343 = vmatpush.msrb.mxu2 %v1630_v36 }
 0x39b   :  { %344 = vmatpush.msrb.mxu2 %v1631_v38 }
 0x39d   :  { %v309_v40 = vpop.xlane.xlu0 %308 }
 0x39e   :  { %1690 = vrcp.f32 %v309_v40 }
 0x39f   :  { %1692 = vpow2.f32 %v405_v41 }
 0x3a4   :  { %v1691_v42 = vpop.eup %1690 }
 0x3a5   :  { %v315_v43 = vmul.f32 %v1691_v42, %v1679_v6  ;;  %v1693_v44 = vpop.eup %1692 }
 0x3a6   :  { %v410_v45 = vsel %vm194_vm9, %v1693_v44, 0.0 }
 0x3a7   :  { %1529 = vmatmul.msk.f32.vlgmr.msrb.gmra.mxu2 %vm194_vm9, %v315_v43 }
 0x3ae   :  { %411 = vadd.xlane.f32.xlu0 %v410_v45 }
 0x3b0   :  { %v1634_v46 = vpop.permute.xlu0 %1633 }
 0x3b1   :  { %v1635_v47 = vunpack.i.l.bf16 %v1634_v46  ;;  %v1636_v48 = vunpack.i.h.bf16 %v1634_v46 }
 0x3b3   :  { %543 = vmatpush.msra.mxu2 %v1635_v47 }
 0x3b5   :  { %544 = vmatpush.msra.mxu2 %v1636_v48 }
 0x3c1   :  { %v512_v52 = vpop.xlane.xlu1 %511 }
 0x3db   :  { %v312_v49 = vpop.xlane.xlu0 %311 }
 0x3dc   :  { %1694 = vrcp.f32 %v312_v49 }
 0x3e2   :  { %v1695_v37 = vpop.eup %1694 }
 0x3e3   :  { %v509_v50 = vpop.xlane.xlu0 %508  ;;  %v316_v51 = vmul.f32 %v1695_v37, %v1683_v24  ;;  %v674_v37 = vld [vmem:[%s2393_s5 + $0x18] sm:$0xff] }
 0x3e4   :  { %1696 = vrcp.f32 %v509_v50  ;;  %v673_v50 = vld [vmem:[%s2393_s5 + $0x10] sm:$0xff] }
 0x3e5   :  { %1530 = vmatmul.msk.f32.gmra.mxu2 %vm194_vm9, %v316_v51  ;;  %1698 = vrcp.f32 %v512_v52  ;;  %v672_v51 = vld [vmem:[%s2393_s5 + $0x8] sm:$0xff]  ;;  %v671_v52 = vld [vmem:[%s2393_s5] sm:$0xff] }
 0x3e6   :  { %1700 = vrcp.f32 %v409_v55 }
 0x3ea   :  { %v1697_v53 = vpop.eup %1696 }
 0x3eb   :  { %v515_v54 = vmul.f32 %v1697_v53, %v1685_v26  ;;  %v1699_v57 = vpop.eup %1698 }
 0x3ec   :  { %v516_v56 = vmul.f32 %v1699_v57, %v2022_v15  ;;  %v1701_v59 = vpop.eup %1700  ;;  %v585_v15 = vld [vmem:[%s2392_s4 + $0x10] sm:$0xff] }
 0x3ed   :  { %1541 = vmatmul.msk.f32.vlgmr.msra.gmra.mxu2 %vm194_vm9, %v515_v54  ;;  %v415_v62 = vmul.f32 %v1701_v59, %v2013_v1  ;;  %606 = vmatpush.msra.mxu0 %v585_v15 }
 0x3ef   :  { %607 = vmatpush.msra.mxu0 %v584_v16 }
 0x3f1   :  { %608 = vmatpush.msra.mxu0 %v583_v17 }
 0x3f5   :  { %1542 = vmatmul.msk.f32.gmra.mxu2 %vm194_vm9, %v516_v56 }
 0x3f6   :  { %v1639_v58 = vpop.permute.xlu0 %1638 }
 0x3f7   :  { %v1640_v60 = vunpack.i.l.bf16 %v1639_v58  ;;  %v1641_v61 = vunpack.i.h.bf16 %v1639_v58 }
 0x3f9   :  { %443 = vmatpush.msrb.mxu1 %v1640_v60  ;;  %v663_v60 = vperm.slane %v1920_v33, 3 }
 0x3fb   :  { %444 = vmatpush.msrb.mxu1 %v1641_v61 }
 0x3fc   :  { %1535 = vmatmul.msk.f32.vlgmr.msrb.gmra.mxu1 %vm194_vm9, %v415_v62 }
 0x3fd   :  { %697 = vmatpush.msra.mxu1 %v674_v37 }
 0x3ff   :  { %698 = vmatpush.msra.mxu1 %v673_v50 }
 0x401   :  { %699 = vmatpush.msra.mxu1 %v672_v51 }
 0x403   :  { %v246_v63 = vpop.f32.mrf.mxu2  ;;  %700 = vmatpush.msra.mxu1 %v671_v52 }
 0x40b   :  { %v249_v4 = vpop.f32.mrf.mxu2 }
 0x421   :  { %v412_v3 = vpop.xlane.xlu0 %411 }
 0x422   :  { %1702 = vrcp.f32 %v412_v3  ;;  %v668_v3 = vperm.slane %v1920_v33, 4 }
 0x428   :  { %v1703_v5 = vpop.eup %1702 }
 0x429   :  { %v416_v6 = vmul.f32 %v1703_v5, %v1693_v44 }
 0x42a   :  { %v346_v7 = vpop.f32.mrf.mxu2 }
 0x42b   :  { %1536 = vmatmul.msk.f32.gmra.mxu1 %vm194_vm9, %v416_v6  ;;  %554 = vrot.lane.b32.xlu2 %v346_v7, %s1806_s19  ;;  %v717_v7 = vld [vmem:[%s2395_s7 + $0x38] sm:$0xff] }
 0x42c   :  { %733 = vmatpush.msra.mxu3 %v717_v7 }
 0x468   :  { %v349_v8 = vpop.f32.mrf.mxu2 }
 0x470   :  { %v546_v9 = vpop.f32.mrf.mxu2 }
 0x471   :  { %570 = vrot.lane.b32.xlu2 %v546_v9, %s1819_s25  ;;  %v715_v9 = vld [vmem:[%s2395_s7 + $0x28] sm:$0xff] }
 0x478   :  { %v549_v11 = vpop.f32.mrf.mxu2 }
 0x479   :  { %v446_v1 = vpop.f32.mrf.mxu1  ;;  %556 = vrot.lane.b32.xlu2 %v349_v8, %s1806_s19  ;;  %v716_v8 = vld [vmem:[%s2395_s7 + $0x30] sm:$0xff] }
 0x47a   :  { %562 = vrot.lane.b32.xlu1 %v446_v1, %s2400_s26  ;;  %734 = vmatpush.msra.mxu3 %v716_v8  ;;  %v714_v1 = vld [vmem:[%s2395_s7 + $0x20] sm:$0xff] }
 0x47c   :  { %735 = vmatpush.msra.mxu3 %v715_v9 }
 0x47e   :  { %736 = vmatpush.msra.mxu3 %v714_v1 }
 0x480   :  { %737 = vmatpush.msra.mxu3 %v713_v14 }
 0x482   :  { %572 = vrot.lane.b32.xlu1 %v549_v11, %s1819_s25 }
 0x485   :  { %v555_v19 = vpop.permute.xlu2 %554 }
 0x486   :  { %v576_v20 = vsel %vm158_vm8, %v246_v63, %v555_v19 }
 0x4a8   :  { %v449_v12 = vpop.f32.mrf.mxu1 }
 0x4a9   :  { %564 = vrot.lane.b32.xlu0 %v449_v12, %s2400_s26 }
 0x4cb   :  { %v571_v22 = vpop.permute.xlu2 %570 }
 0x4d3   :  { %v557_v25 = vpop.permute.xlu2 %556 }
 0x4d4   :  { %v577_v26 = vsel %vm158_vm8, %v249_v4, %v557_v25 }
 0x4ec   :  { %v563_v21 = vpop.permute.xlu1 %562 }
 0x4ed   :  { %v578_v23 = vsel %vm194_vm9, %v576_v20, %v563_v21 }
 0x4ee   :  { %v581_v24 = vsel %vm580_vm10, %v578_v23, %v571_v22 }
 0x4ef   :  { %1543 = vmatmul.msk.f32.vlgmr.msra.gmra.mxu0 %vm57_vm0, %v581_v24 }
 0x4f4   :  { %v573_v28 = vpop.permute.xlu1 %572 }
 0x51b   :  { %v565_v27 = vpop.permute.xlu0 %564 }
 0x51c   :  { %v579_v29 = vsel %vm194_vm9, %v577_v26, %v565_v27  ;;  %v712_v27 = vld [vmem:[%s2395_s7 + $0x10] sm:$0xff] }
 0x51d   :  { %v582_v31 = vsel %vm580_vm10, %v579_v29, %v573_v28  ;;  %738 = vmatpush.msra.mxu3 %v712_v27  ;;  %v711_v28 = vld [vmem:[%s2395_s7 + $0x8] sm:$0xff]  ;;  %v710_v29 = vld [vmem:[%s2395_s7] sm:$0xff] }
 0x51e   :  { %1544 = vmatmul.msk.f32.gmra.mxu0 %vm57_vm0, %v582_v31  ;;  %v1663_v31 = vld [vmem:[%s2394_s6] ss:$0 sm:$0xff] }
 0x51f   :  { %739 = vmatpush.msra.mxu3 %v711_v28  ;;  %v1664_v28 = vld [vmem:[%s2391_s3 + $0x1] ss:$0 sm:$0xff]  ;;  %s2402_s3 = smov 16  }
 0x521   :  { %740 = vmatpush.msra.mxu3 %v710_v29 }
 0x56c   :  { %v610_v30 = vpop.f32.mrf.mxu0 }
 0x56d   :  { %v616_v34 = vadd.f32 %v610_v30, %v1886_v0 }
 0x56f   :  { %v2071_v35 = vadd.f32 %v618_v32, %v616_v34 }
 0x571   :  { %v621_v36 = vsel %vm57_vm0, %v2071_v35, 0.0 }
 0x572   :  { %622 = vadd.xlane.f32.xlu2 %v621_v36 }
 0x59b   :  { %v613_v38 = vpop.f32.mrf.mxu0 }
 0x59c   :  { %v617_v39 = vadd.f32 %v613_v38, %v1893_v2 }
 0x59e   :  { %v2076_v40 = vadd.f32 %v618_v32, %v617_v39 }
 0x5a0   :  { %v624_v41 = vsel %vm57_vm0, %v2076_v40, 0.0 }
 0x5a1   :  { %625 = vadd.xlane.f32.xlu1 %v624_v41  ;;  %v750_v41 = vperm.slane %v1920_v33, 5 }
 0x5e5   :  { %v623_v42 = vpop.xlane.xlu2 %622 }
 0x5e6   :  { %v627_v43 = vmul.f32 %v623_v42, %v1897_v10 }
 0x5e8   :  { %v629_v0 = vsub.f32 %v2071_v35, %v627_v43 }
 0x5ea   :  { %v631_v44 = vmul.f32 %v629_v0, %v629_v0  ;;  %v664_v63 = vmul.f32 %v663_v60, %v629_v0 }
 0x5ec   :  { %v633_v45 = vsel %vm57_vm0, %v631_v44, 0.0 }
 0x5ed   :  { %634 = vadd.xlane.f32.xlu0 %v633_v45 }
 0x614   :  { %v626_v46 = vpop.xlane.xlu1 %625 }
 0x615   :  { %v628_v47 = vmul.f32 %v626_v46, %v1897_v10 }
 0x617   :  { %v630_v2 = vsub.f32 %v2076_v40, %v628_v47 }
 0x619   :  { %v632_v48 = vmul.f32 %v630_v2, %v630_v2  ;;  %v665_v23 = vmul.f32 %v663_v60, %v630_v2 }
 0x61b   :  { %v636_v49 = vsel %vm57_vm0, %v632_v48, 0.0 }
 0x61c   :  { %637 = vadd.xlane.f32.xlu2 %v636_v49 }
 0x660   :  { %v635_v53 = vpop.xlane.xlu0 %634 }
 0x661   :  { %v639_v54 = vmul.f32 0.032258064, %v635_v53 }
 0x663   :  { %v641_v55 = vadd.f32 1e-12, %v639_v54  ;;  %v1553_v54 = vld [vmem:[%s2390_s2 + $0x38] sm:$0xff] }
 0x664   :  { %833 = vmatpush.msrb.mxu2 %v1553_v54 }
 0x665   :  { %1704 = vrsqrt.f32 %v641_v55  ;;  %vm649_vm12 = vweird.f32 %v641_v55 }
 0x66b   :  { %v1705_v57 = vpop.eup %1704 }
 0x66c   :  { %v644_v56 = vmul.f32 %v1705_v57, %v641_v55  ;;  %vm650_vm11 = vweird.f32 %v1705_v57  ;;  %v1552_v55 = vld [vmem:[%s2390_s2 + $0x30] sm:$0xff] }
 0x66d   :  { %vm651_vm13 = vmor %vm649_vm12, %vm650_vm11  ;;  %834 = vmatpush.msrb.mxu2 %v1552_v55 }
 0x66e   :  { %v645_v58 = vmul.f32 %v1705_v57, %v644_v56  ;;  %v1550_v56 = vld [vmem:[%s2390_s2 + $0x20] sm:$0xff] }
 0x670   :  { %v646_v59 = vmul.f32 0.5, %v645_v58 }
 0x672   :  { %v647_v61 = vsub.f32 1.5, %v646_v59 }
 0x674   :  { %v648_v62 = vmul.f32 %v1705_v57, %v647_v61 }
 0x676   :  { %v652_v4 = vsel %vm651_vm13, %v1705_v57, %v648_v62  ;;  %v1551_v57 = vld [vmem:[%s2390_s2 + $0x28] sm:$0xff] }
 0x677   :  { %v666_v5 = vmul.f32 %v664_v63, %v652_v4  ;;  %835 = vmatpush.msrb.mxu2 %v1551_v57  ;;  %v2163_v63 = vld [vmem:[%s2396_s8 + $0x8] sm:$0x3f] }
 0x678   :  { %v802_v9 = vperm.slane %v2163_v63, 1 }
 0x679   :  { %v669_v6 = vadd.f32 %v668_v3, %v666_v5  ;;  %836 = vmatpush.msrb.mxu2 %v1550_v56  ;;  %v797_v5 = vperm.slane %v2163_v63, 0 }
 0x67b   :  { %1545 = vmatmul.msk.f32.vlgmr.msra.gmra.mxu1 %vm57_vm0, %v669_v6 }
 0x68f   :  { %v638_v11 = vpop.xlane.xlu2 %637 }
 0x690   :  { %v640_v12 = vmul.f32 0.032258064, %v638_v11 }
 0x692   :  { %v642_v15 = vadd.f32 1e-12, %v640_v12 }
 0x694   :  { %1706 = vrsqrt.f32 %v642_v15  ;;  %vm659_vm15 = vweird.f32 %v642_v15 }
 0x69a   :  { %v1707_v16 = vpop.eup %1706 }
 0x69b   :  { %v654_v17 = vmul.f32 %v1707_v16, %v642_v15  ;;  %vm660_vm14 = vweird.f32 %v1707_v16 }
 0x69c   :  { %vm661_vm1 = vmor %vm659_vm15, %vm660_vm14 }
 0x69d   :  { %v655_v19 = vmul.f32 %v1707_v16, %v654_v17 }
 0x69f   :  { %v656_v20 = vmul.f32 0.5, %v655_v19 }
 0x6a1   :  { %v657_v21 = vsub.f32 1.5, %v656_v20 }
 0x6a3   :  { %v658_v22 = vmul.f32 %v1707_v16, %v657_v21 }
 0x6a5   :  { %v662_v24 = vsel %vm661_vm1, %v1707_v16, %v658_v22 }
 0x6a6   :  { %v667_v25 = vmul.f32 %v665_v23, %v662_v24 }
 0x6a8   :  { %v670_v26 = vadd.f32 %v668_v3, %v667_v25 }
 0x6aa   :  { %1546 = vmatmul.msk.f32.gmra.mxu1 %vm57_vm0, %v670_v26 }
 0x6f8   :  { %v702_v32 = vpop.f32.mrf.mxu1 }
 0x6f9   :  { %v703_v30 = vadd.f32 %v1663_v31, %v702_v32 }
 0x6fb   :  { %v708_v34 = vmax.f32 %v703_v30, 0.0 }
 0x6fd   :  { %1547 = vmatmul.msk.f32.vlgmr.msra.gmra.mxu3 %vm718_vm2, %v708_v34 }
 0x727   :  { %v705_v36 = vpop.f32.mrf.mxu1 }
 0x728   :  { %v706_v38 = vadd.f32 %v1663_v31, %v705_v36 }
 0x72a   :  { %v709_v39 = vmax.f32 %v706_v38, 0.0 }
 0x72c   :  { %1548 = vmatmul.msk.f32.gmra.mxu3 %vm718_vm2, %v709_v39 }
 0x780   :  { %v742_v42 = vpop.f32.mrf.mxu3 }
 0x781   :  { %v748_v43 = vadd.f32 %v742_v42, %v2071_v35 }
 0x783   :  { %v2133_v0 = vadd.f32 %v750_v41, %v748_v43 }
 0x785   :  { %v755_v44 = vsel %vm57_vm0, %v2133_v0, 0.0 }
 0x786   :  { %756 = vadd.xlane.f32.xlu1 %v755_v44 }
 0x7af   :  { %v745_v45 = vpop.f32.mrf.mxu3 }
 0x7b0   :  { %v749_v46 = vadd.f32 %v745_v45, %v2076_v40 }
 0x7b2   :  { %v2138_v47 = vadd.f32 %v750_v41, %v749_v46 }
 0x7b4   :  { %v758_v2 = vsel %vm57_vm0, %v2138_v47, 0.0 }
 0x7b5   :  { %759 = vadd.xlane.f32.xlu2 %v758_v2 }
 0x7f9   :  { %v757_v48 = vpop.xlane.xlu1 %756 }
 0x7fa   :  { %v761_v33 = vmul.f32 %v757_v48, %v1897_v10 }
 0x7fc   :  { %v763_v35 = vsub.f32 %v2133_v0, %v761_v33 }
 0x7fe   :  { %v765_v49 = vmul.f32 %v763_v35, %v763_v35  ;;  %v798_v8 = vmul.f32 %v797_v5, %v763_v35 }
 0x800   :  { %v767_v37 = vsel %vm57_vm0, %v765_v49, 0.0 }
 0x801   :  { %768 = vadd.xlane.f32.xlu1 %v767_v37 }
 0x828   :  { %v760_v50 = vpop.xlane.xlu2 %759 }
 0x829   :  { %v762_v51 = vmul.f32 %v760_v50, %v1897_v10 }
 0x82b   :  { %v764_v40 = vsub.f32 %v2138_v47, %v762_v51 }
 0x82d   :  { %v766_v52 = vmul.f32 %v764_v40, %v764_v40  ;;  %v799_v24 = vmul.f32 %v797_v5, %v764_v40 }
 0x82f   :  { %v770_v53 = vsel %vm57_vm0, %v766_v52, 0.0 }
 0x830   :  { %771 = vadd.xlane.f32.xlu0 %v770_v53 }
 0x874   :  { %v769_v58 = vpop.xlane.xlu1 %768 }
 0x875   :  { %v773_v59 = vmul.f32 0.032258064, %v769_v58 }
 0x877   :  { %v775_v60 = vadd.f32 1e-12, %v773_v59 }
 0x879   :  { %1708 = vrsqrt.f32 %v775_v60  ;;  %vm783_vm4 = vweird.f32 %v775_v60 }
 0x87f   :  { %v1709_v61 = vpop.eup %1708 }
 0x880   :  { %v778_v62 = vmul.f32 %v1709_v61, %v775_v60  ;;  %vm784_vm3 = vweird.f32 %v1709_v61 }
 0x881   :  { %vm785_vm5 = vmor %vm783_vm4, %vm784_vm3 }
 0x882   :  { %v779_v3 = vmul.f32 %v1709_v61, %v778_v62 }
 0x884   :  { %v780_v4 = vmul.f32 0.5, %v779_v3 }
 0x886   :  { %v781_v6 = vsub.f32 1.5, %v780_v4 }
 0x888   :  { %v782_v7 = vmul.f32 %v1709_v61, %v781_v6 }
 0x88a   :  { %v786_v1 = vsel %vm785_vm5, %v1709_v61, %v782_v7 }
 0x88b   :  { %v800_v11 = vmul.f32 %v798_v8, %v786_v1 }
 0x88d   :  { %v803_v12 = vadd.f32 %v802_v9, %v800_v11 }
 0x88f   :  { %1555 = vmatmul.msk.f32.vlgmr.msrb.gmra.mxu2 %vm57_vm0, %v803_v12 }
 0x8a3   :  { %v772_v14 = vpop.xlane.xlu0 %771 }
 0x8a4   :  { %v774_v15 = vmul.f32 0.032258064, %v772_v14 }
 0x8a6   :  { %v776_v16 = vadd.f32 1e-12, %v774_v15 }
 0x8a8   :  { %1710 = vrsqrt.f32 %v776_v16  ;;  %vm793_vm7 = vweird.f32 %v776_v16 }
 0x8ae   :  { %v1711_v17 = vpop.eup %1710 }
 0x8af   :  { %v788_v19 = vmul.f32 %v1711_v17, %v776_v16  ;;  %vm794_vm6 = vweird.f32 %v1711_v17 }
 0x8b0   :  { %vm795_vm11 = vmor %vm793_vm7, %vm794_vm6 }
 0x8b1   :  { %v789_v20 = vmul.f32 %v1711_v17, %v788_v19 }
 0x8b3   :  { %v790_v21 = vmul.f32 0.5, %v789_v20 }
 0x8b5   :  { %v791_v22 = vsub.f32 1.5, %v790_v21 }
 0x8b7   :  { %v792_v23 = vmul.f32 %v1711_v17, %v791_v22 }
 0x8b9   :  { %v796_v25 = vsel %vm795_vm11, %v1711_v17, %v792_v23 }
 0x8ba   :  { %v801_v26 = vmul.f32 %v799_v24, %v796_v25 }
 0x8bc   :  { %v804_v27 = vadd.f32 %v802_v9, %v801_v26 }
 0x8be   :  { %1556 = vmatmul.msk.f32.gmra.mxu2 %vm57_vm0, %v804_v27 }
 0x912   :  { %v838_v29 = vpop.f32.mrf.mxu2 }
 0x913   :  { %v2172_v31 = vadd.f32 %v1664_v28, %v838_v29 }
 0x915   :  { %942 = vrot.lane.b32.xlu0 %v2172_v31, %s1813_s21  ;;  %946 = vrot.lane.b32.xlu1 %v2172_v31, %s1808_s14 }
 0x91d   :  { %846 = vrot.lane.b32.xlu0 %v2172_v31, %s1810_s16 }
 0x925   :  { %1146 = vrot.lane.b32.xlu0 %v2172_v31, %s1812_s20 }
 0x92d   :  { %1046 = vrot.lane.b32.xlu0 %v2172_v31, %s1809_s15 }
 0x941   :  { %v841_v32 = vpop.f32.mrf.mxu2 }
 0x942   :  { %v2184_v30 = vadd.f32 %v1664_v28, %v841_v32 }
 0x944   :  { %948 = vrot.lane.b32.xlu2 %v2184_v30, %s1808_s14  ;;  %1044 = vrot.lane.b32.xlu0 %v2184_v30, %s1811_s17  ;;  %v1642_v20 = vpack.i.bf16 %v2172_v31, %v2184_v30 }
 0x945   :  { %944 = vrot.lane.b32.xlu1 %v2184_v30, %s1813_s21 }
 0x94c   :  { %848 = vrot.lane.b32.xlu2 %v2184_v30, %s1810_s16 }
 0x94d   :  { %1142 = vrot.lane.b32.xlu1 %v2172_v31, %s1814_s1 }
 0x954   :  { %1148 = vrot.lane.b32.xlu2 %v2184_v30, %s1812_s20 }
 0x955   :  { %1144 = vrot.lane.b32.xlu1 %v2184_v30, %s1814_s1 }
 0x95c   :  { %1048 = vrot.lane.b32.xlu2 %v2184_v30, %s1809_s15 }
 0x964   :  { %1042 = vrot.lane.b32.xlu2 %v2172_v31, %s1811_s17 }
 0x987   :  { %v943_v34 = vpop.permute.xlu0 %942  ;;  %v947_v38 = vpop.permute.xlu1 %946 }
 0x98f   :  { %v847_v39 = vpop.permute.xlu0 %846 }
 0x997   :  { %v1147_v43 = vpop.permute.xlu0 %1146 }
 0x99e   :  { %v949_v36 = vpop.permute.xlu2 %948 }
 0x99f   :  { %1563 = vmatpush.xpose.msk.msrb.mxu3 %vm158_vm8, %v949_v36  ;;  %v1047_v46 = vpop.permute.xlu0 %1046 }
 0x9a3   :  { %1564 = vmatpush.xpose.msk.msrb.mxu3 %vm158_vm8, %v947_v38 }
 0x9a6   :  { %v849_v41 = vpop.permute.xlu2 %848  ;;  %1565 = vmatmul.msk.f32.vlgmr.msrb.gmra.mxu3 %vm158_vm8, %v943_v34 }
 0x9a7   :  { %1557 = vmatpush.xpose.msk.msrb.mxu0 %vm158_vm8, %v849_v41 }
 0x9ab   :  { %1558 = vmatpush.xpose.msk.msrb.mxu0 %vm158_vm8, %v847_v39 }
 0x9ae   :  { %v1149_v42 = vpop.permute.xlu2 %1148  ;;  %1559 = vmatmul.msk.f32.vlgmr.msrb.gmra.mxu0 %vm158_vm8, %v2172_v31 }
 0x9af   :  { %1575 = vmatpush.xpose.msk.msra.mxu3 %vm158_vm8, %v1149_v42 }
 0x9b3   :  { %1576 = vmatpush.xpose.msk.msra.mxu3 %vm158_vm8, %v1147_v43 }
 0x9b6   :  { %v1049_v44 = vpop.permute.xlu2 %1048  ;;  %1560 = vmatmul.msk.f32.gmra.mxu0 %vm158_vm8, %v2184_v30  ;;  %v1045_v33 = vpop.permute.xlu0 %1044 }
 0x9b7   :  { %v945_v45 = vpop.permute.xlu1 %944  ;;  %1569 = vmatpush.xpose.msk.msra.mxu0 %vm158_vm8, %v1049_v44 }
 0x9b8   :  { %1566 = vmatmul.msk.f32.gmra.mxu3 %vm158_vm8, %v945_v45 }
 0x9bb   :  { %1570 = vmatpush.xpose.msk.msra.mxu0 %vm158_vm8, %v1047_v46 }
 0x9be   :  { %v1043_v2 = vpop.permute.xlu2 %1042 }
 0x9bf   :  { %v1143_v48 = vpop.permute.xlu1 %1142  ;;  %1571 = vmatmul.msk.f32.vlgmr.msra.gmra.mxu0 %vm158_vm8, %v1043_v2 }
 0x9c0   :  { %1577 = vmatmul.msk.f32.vlgmr.msra.gmra.mxu3 %vm158_vm8, %v1143_v48 }
 0x9c7   :  { %v1145_v35 = vpop.permute.xlu1 %1144  ;;  %1572 = vmatmul.msk.f32.gmra.mxu0 %vm158_vm8, %v1045_v33 }
 0x9c8   :  { %1578 = vmatmul.msk.f32.gmra.mxu3 %vm158_vm8, %v1145_v35 }
 0xa29   :  { %v975_v49 = vpop.f32.mrf.mxu3 }
 0xa2a   :  { %v981_v37 = vmul.f32 0.35355338, %v975_v49 }
 0xa2b   :  { %v875_v50 = vpop.f32.mrf.mxu0 }
 0xa2c   :  { %v881_v51 = vmul.f32 0.35355338, %v875_v50  ;;  %v983_v40 = vadd.f32 %v981_v37, %v1979_v13 }
 0xa2e   :  { %v985_v52 = vsel %vm194_vm9, %v983_v40, -inf  ;;  %v883_v53 = vadd.f32 %v881_v51, %v1979_v13 }
 0xa2f   :  { %986 = vmax.xlane.f32.xlu1 %v985_v52 }
 0xa30   :  { %v885_v54 = vsel %vm194_vm9, %v883_v53, -inf }
 0xa31   :  { %886 = vmax.xlane.f32.xlu2 %v885_v54 }
 0xa33   :  { %v878_v55 = vpop.f32.mrf.mxu0 }
 0xa34   :  { %v882_v57 = vmul.f32 0.35355338, %v878_v55 }
 0xa36   :  { %v884_v56 = vadd.f32 %v882_v57, %v1983_v18 }
 0xa38   :  { %v888_v58 = vsel %vm194_vm9, %v884_v56, -inf }
 0xa39   :  { %889 = vmax.xlane.f32.xlu1 %v888_v58 }
 0xa3b   :  { %v978_v59 = vpop.f32.mrf.mxu3 }
 0xa3c   :  { %v982_v60 = vmul.f32 0.35355338, %v978_v59  ;;  %v1075_v61 = vpop.f32.mrf.mxu0 }
 0xa3d   :  { %v1081_v3 = vmul.f32 0.35355338, %v1075_v61 }
 0xa3e   :  { %v984_v62 = vadd.f32 %v982_v60, %v1983_v18 }
 0xa3f   :  { %v1083_v7 = vadd.f32 %v1081_v3, %v1979_v13 }
 0xa40   :  { %v988_v4 = vsel %vm194_vm9, %v984_v62, -inf }
 0xa41   :  { %989 = vmax.xlane.f32.xlu0 %v988_v4  ;;  %v1085_v11 = vsel %vm194_vm9, %v1083_v7, -inf }
 0xa43   :  { %v1175_v5 = vpop.f32.mrf.mxu3 }
 0xa44   :  { %v1181_v6 = vmul.f32 0.35355338, %v1175_v5  ;;  %v1078_v8 = vpop.f32.mrf.mxu0 }
 0xa45   :  { %v1082_v1 = vmul.f32 0.35355338, %v1078_v8 }
 0xa46   :  { %v2232_v9 = vadd.f32 %v1181_v6, %v1979_v13 }
 0xa47   :  { %v2238_v16 = vadd.f32 %v1082_v1, %v1983_v18 }
 0xa48   :  { %v1185_v12 = vsel %vm194_vm9, %v2232_v9, -inf }
 0xa49   :  { %1086 = vmax.xlane.f32.xlu0 %v1085_v11  ;;  %1186 = vmax.xlane.f32.xlu2 %v1185_v12  ;;  %v1088_v19 = vsel %vm194_vm9, %v2238_v16, -inf }
 0xa4b   :  { %v1178_v14 = vpop.f32.mrf.mxu3 }
 0xa4c   :  { %v1182_v15 = vmul.f32 0.35355338, %v1178_v14 }
 0xa4e   :  { %v1184_v17 = vadd.f32 %v1182_v15, %v1983_v18 }
 0xa50   :  { %v1188_v13 = vsel %vm194_vm9, %v1184_v17, -inf }
 0xa51   :  { %1089 = vmax.xlane.f32.xlu2 %v1088_v19  ;;  %1189 = vmax.xlane.f32.xlu1 %v1188_v13 }
 0xa69   :  { %1643 = vrot.lane.b32.xlu2 %v1642_v20, %s1816_s0 }
 0xaa2   :  { %v987_v21 = vpop.xlane.xlu1 %986 }
 0xaa3   :  { %v991_v22 = vsub.f32 %v983_v40, %v987_v21 }
 0xaa4   :  { %v887_v23 = vpop.xlane.xlu2 %886 }
 0xaa5   :  { %v993_v24 = vmul.f32 1.442695, %v991_v22  ;;  %v891_v25 = vsub.f32 %v883_v53, %v887_v23 }
 0xaa7   :  { %1712 = vpow2.f32 %v993_v24  ;;  %v893_v26 = vmul.f32 1.442695, %v891_v25 }
 0xaa9   :  { %1714 = vpow2.f32 %v893_v26 }
 0xaac   :  { %v890_v18 = vpop.xlane.xlu1 %889 }
 0xaad   :  { %v1713_v27 = vpop.eup %1712  ;;  %v892_v28 = vsub.f32 %v884_v56, %v890_v18 }
 0xaae   :  { %v997_v29 = vsel %vm194_vm9, %v1713_v27, 0.0 }
 0xaaf   :  { %v2248_v32 = vpop.eup %1714  ;;  %v895_v34 = vmul.f32 1.442695, %v892_v28  ;;  %998 = vadd.xlane.f32.xlu0 %v997_v29 }
 0xab0   :  { %v897_v31 = vsel %vm194_vm9, %v2248_v32, 0.0 }
 0xab1   :  { %1716 = vpow2.f32 %v895_v34  ;;  %898 = vadd.xlane.f32.xlu1 %v897_v31 }
 0xab4   :  { %v990_v30 = vpop.xlane.xlu0 %989 }
 0xab5   :  { %v992_v36 = vsub.f32 %v984_v62, %v990_v30 }
 0xab7   :  { %v2252_v38 = vpop.eup %1716  ;;  %v995_v39 = vmul.f32 1.442695, %v992_v36 }
 0xab8   :  { %v900_v41 = vsel %vm194_vm9, %v2252_v38, 0.0 }
 0xab9   :  { %1718 = vpow2.f32 %v995_v39  ;;  %901 = vadd.xlane.f32.xlu0 %v900_v41 }
 0xabc   :  { %v1087_v42 = vpop.xlane.xlu0 %1086  ;;  %v1187_v43 = vpop.xlane.xlu2 %1186 }
 0xabd   :  { %v1091_v44 = vsub.f32 %v1083_v7, %v1087_v42  ;;  %v1191_v53 = vsub.f32 %v2232_v9, %v1187_v43 }
 0xabf   :  { %v1719_v45 = vpop.eup %1718  ;;  %v1093_v46 = vmul.f32 1.442695, %v1091_v44  ;;  %v1193_v55 = vmul.f32 1.442695, %v1191_v53 }
 0xac0   :  { %v1000_v2 = vsel %vm194_vm9, %v1719_v45, 0.0 }
 0xac1   :  { %1720 = vpow2.f32 %v1093_v46  ;;  %1001 = vadd.xlane.f32.xlu0 %v1000_v2 }
 0xac4   :  { %v1090_v48 = vpop.xlane.xlu2 %1089  ;;  %v1190_v51 = vpop.xlane.xlu1 %1189 }
 0xac5   :  { %v1192_v40 = vsub.f32 %v1184_v17, %v1190_v51  ;;  %v1092_v62 = vsub.f32 %v2238_v16, %v1090_v48  ;;  %v1584_v48 = vld [vmem:[%s2392_s4 + $0x38] sm:$0xff] }
 0xac6   :  { %1295 = vmatpush.msrb.mxu0 %v1584_v48 }
 0xac7   :  { %v2257_v33 = vpop.eup %1720  ;;  %v1195_v52 = vmul.f32 1.442695, %v1192_v40  ;;  %v1095_v4 = vmul.f32 1.442695, %v1092_v62 }
 0xac8   :  { %v1097_v35 = vsel %vm194_vm9, %v2257_v33, 0.0 }
 0xac9   :  { %1098 = vadd.xlane.f32.xlu2 %v1097_v35  ;;  %1722 = vpow2.f32 %v1195_v52  ;;  %v1582_v35 = vld [vmem:[%s2392_s4 + $0x28] sm:$0xff] }
 0xaca   :  { %1648 = vrot.lane.b32.xlu1 %v1642_v20, %s1815_s22  ;;  %1724 = vpow2.f32 %v1193_v55 }
 0xacc   :  { %v1644_v49 = vpop.permute.xlu2 %1643 }
 0xacd   :  { %v1645_v37 = vunpack.i.l.bf16 %v1644_v49  ;;  %v1646_v50 = vunpack.i.h.bf16 %v1644_v49  ;;  %v1581_v49 = vld [vmem:[%s2392_s4 + $0x20] sm:$0xff] }
 0xacf   :  { %1033 = vmatpush.msra.mxu2 %v1645_v37  ;;  %v1723_v54 = vpop.eup %1722 }
 0xad0   :  { %v1200_v57 = vsel %vm194_vm9, %v1723_v54, 0.0  ;;  %v1725_v56 = vpop.eup %1724 }
 0xad1   :  { %1034 = vmatpush.msra.mxu2 %v1646_v50  ;;  %v1197_v58 = vsel %vm194_vm9, %v1725_v56, 0.0 }
 0xad5   :  { %1653 = vrot.lane.b32.xlu0 %v1642_v20, %s1817_s23 }
 0xaf4   :  { %1201 = vadd.xlane.f32.xlu1 %v1200_v57 }
 0xaff   :  { %1198 = vadd.xlane.f32.xlu0 %v1197_v58 }
 0xb13   :  { %1658 = vrot.lane.b32.xlu0 %v1642_v20, %s1818_s24  ;;  %s1504_s24 = sshll.u32 %s2398_s10, 4  ;;  %s1505_s24 = int_to_ptr.hbm [resolvable:$true] %s1504_s24 }
 0xb22   :  { %v999_v59 = vpop.xlane.xlu0 %998 }
 0xb23   :  { %1726 = vrcp.f32 %v999_v59 }
 0xb24   :  { %1728 = vpow2.f32 %v1095_v4  ;;  %v899_v5 = vpop.xlane.xlu1 %898 }
 0xb29   :  { %v1727_v60 = vpop.eup %1726 }
 0xb2a   :  { %v1005_v61 = vmul.f32 %v1727_v60, %v1713_v27  ;;  %v1729_v7 = vpop.eup %1728  ;;  %v1308_v60 = vperm.slane %v2163_v63, 2 }
 0xb2b   :  { %v1100_v1 = vsel %vm194_vm9, %v1729_v7, 0.0 }
 0xb2c   :  { %1567 = vmatmul.msk.f32.vlgmr.msra.gmra.mxu2 %vm194_vm9, %v1005_v61  ;;  %v902_v3 = vpop.xlane.xlu0 %901 }
 0xb34   :  { %v1002_v6 = vpop.xlane.xlu0 %1001 }
 0xb35   :  { %1730 = vrcp.f32 %v1002_v6 }
 0xb36   :  { %1732 = vrcp.f32 %v899_v5 }
 0xb37   :  { %1734 = vrcp.f32 %v902_v3 }
 0xb3b   :  { %v1731_v8 = vpop.eup %1730 }
 0xb3c   :  { %v1649_v9 = vpop.permute.xlu1 %1648  ;;  %v1006_v11 = vmul.f32 %v1731_v8, %v1719_v45  ;;  %v1733_v12 = vpop.eup %1732 }
 0xb3d   :  { %v1650_v14 = vunpack.i.l.bf16 %v1649_v9  ;;  %1101 = vadd.xlane.f32.xlu0 %v1100_v1  ;;  %v1651_v15 = vunpack.i.h.bf16 %v1649_v9  ;;  %v905_v16 = vmul.f32 %v1733_v12, %v2248_v32  ;;  %v1735_v17 = vpop.eup %1734  ;;  %v1099_v26 = vpop.xlane.xlu2 %1098 }
 0xb3e   :  { %1568 = vmatmul.msk.f32.gmra.mxu2 %vm194_vm9, %v1006_v11  ;;  %v906_v20 = vmul.f32 %v1735_v17, %v2252_v38 }
 0xb3f   :  { %933 = vmatpush.msrb.mxu1 %v1650_v14 }
 0xb41   :  { %934 = vmatpush.msrb.mxu1 %v1651_v15 }
 0xb42   :  { %1561 = vmatmul.msk.f32.vlgmr.msrb.gmra.mxu1 %vm194_vm9, %v905_v16 }
 0xb47   :  { %v1654_v19 = vpop.permute.xlu0 %1653 }
 0xb48   :  { %v1655_v13 = vunpack.i.l.bf16 %v1654_v19  ;;  %v1656_v21 = vunpack.i.h.bf16 %v1654_v19  ;;  %v1590_v19 = vld [vmem:[%s2393_s5 + $0x38] sm:$0xff] }
 0xb4a   :  { %1562 = vmatmul.msk.f32.gmra.mxu1 %vm194_vm9, %v906_v20  ;;  %1233 = vmatpush.msrb.mxu2 %v1655_v13  ;;  %v1589_v13 = vld [vmem:[%s2393_s5 + $0x30] sm:$0xff]  ;;  %v1588_v20 = vld [vmem:[%s2393_s5 + $0x28] sm:$0xff] }
 0xb4c   :  { %1234 = vmatpush.msrb.mxu2 %v1656_v21  ;;  %v1587_v21 = vld [vmem:[%s2393_s5 + $0x20] sm:$0xff] }
 0xb67   :  { %v1202_v23 = vpop.xlane.xlu1 %1201 }
 0xb72   :  { %v1199_v22 = vpop.xlane.xlu0 %1198 }
 0xb73   :  { %1736 = vrcp.f32 %v1199_v22 }
 0xb74   :  { %1738 = vrcp.f32 %v1202_v23 }
 0xb75   :  { %1740 = vrcp.f32 %v1099_v26 }
 0xb79   :  { %v1737_v24 = vpop.eup %1736 }
 0xb7a   :  { %v1205_v25 = vmul.f32 %v1737_v24, %v1725_v56  ;;  %v1739_v18 = vpop.eup %1738 }
 0xb7b   :  { %v1206_v27 = vmul.f32 %v1739_v18, %v1723_v54  ;;  %v1741_v29 = vpop.eup %1740 }
 0xb7c   :  { %1579 = vmatmul.msk.f32.vlgmr.msrb.gmra.mxu2 %vm194_vm9, %v1205_v25  ;;  %v1105_v31 = vmul.f32 %v1741_v29, %v2257_v33  ;;  %v1583_v33 = vld [vmem:[%s2392_s4 + $0x30] sm:$0xff] }
 0xb7d   :  { %1296 = vmatpush.msrb.mxu0 %v1583_v33 }
 0xb7f   :  { %1297 = vmatpush.msrb.mxu0 %v1582_v35 }
 0xb81   :  { %1298 = vmatpush.msrb.mxu0 %v1581_v49 }
 0xb84   :  { %1580 = vmatmul.msk.f32.gmra.mxu2 %vm194_vm9, %v1206_v27 }
 0xb85   :  { %v1659_v28 = vpop.permute.xlu0 %1658 }
 0xb86   :  { %v1660_v32 = vunpack.i.l.bf16 %v1659_v28  ;;  %v1661_v34 = vunpack.i.h.bf16 %v1659_v28  ;;  %v1353_v28 = vperm.slane %v2163_v63, 3 }
 0xb88   :  { %1133 = vmatpush.msra.mxu1 %v1660_v32 }
 0xb8a   :  { %1134 = vmatpush.msra.mxu1 %v1661_v34 }
 0xb8b   :  { %1573 = vmatmul.msk.f32.vlgmr.msra.gmra.mxu1 %vm194_vm9, %v1105_v31  ;;  %v1358_v31 = vperm.slane %v2163_v63, 4 }
 0xb8c   :  { %1389 = vmatpush.msrb.mxu1 %v1590_v19 }
 0xb8e   :  { %1390 = vmatpush.msrb.mxu1 %v1589_v13 }
 0xb90   :  { %1391 = vmatpush.msrb.mxu1 %v1588_v20 }
 0xb92   :  { %1392 = vmatpush.msrb.mxu1 %v1587_v21 }
 0xbaf   :  { %v1036_v30 = vpop.f32.mrf.mxu2 }
 0xbb0   :  { %1244 = vrot.lane.b32.xlu2 %v1036_v30, %s1806_s19  ;;  %v1102_v36 = vpop.xlane.xlu0 %1101 }
 0xbb1   :  { %1742 = vrcp.f32 %v1102_v36 }
 0xbb7   :  { %v1743_v38 = vpop.eup %1742 }
 0xbb8   :  { %v1106_v39 = vmul.f32 %v1743_v38, %v1729_v7 }
 0xbba   :  { %1574 = vmatmul.msk.f32.gmra.mxu1 %vm194_vm9, %v1106_v39  ;;  %v1601_v39 = vld [vmem:[%s2395_s7 + $0x78] sm:$0xff] }
 0xbbb   :  { %1425 = vmatpush.msrb.mxu3 %v1601_v39 }
 0xbbf   :  { %v936_v41 = vpop.f32.mrf.mxu1 }
 0xbc1   :  { %v1039_v42 = vpop.f32.mrf.mxu2 }
 0xbc7   :  { %v939_v44 = vpop.f32.mrf.mxu1 }
 0xbff   :  { %v1236_v43 = vpop.f32.mrf.mxu2 }
 0xc00   :  { %1260 = vrot.lane.b32.xlu2 %v1236_v43, %s1819_s25  ;;  %v1598_v43 = vld [vmem:[%s2395_s7 + $0x60] sm:$0xff] }
 0xc07   :  { %v1239_v46 = vpop.f32.mrf.mxu2 }
 0xc08   :  { %1246 = vrot.lane.b32.xlu2 %v1039_v42, %s1806_s19  ;;  %v1136_v45 = vpop.f32.mrf.mxu1  ;;  %v1599_v42 = vld [vmem:[%s2395_s7 + $0x68] sm:$0xff] }
 0xc09   :  { %1252 = vrot.lane.b32.xlu1 %v1136_v45, %s2402_s3 }
 0xc0a   :  { %v1245_v37 = vpop.permute.xlu2 %1244 }
 0xc0b   :  { %v1266_v50 = vsel %vm158_vm8, %v936_v41, %v1245_v37  ;;  %v1600_v41 = vld [vmem:[%s2395_s7 + $0x70] sm:$0xff] }
 0xc0c   :  { %1426 = vmatpush.msrb.mxu3 %v1600_v41 }
 0xc0e   :  { %1427 = vmatpush.msrb.mxu3 %v1599_v42 }
 0xc10   :  { %1428 = vmatpush.msrb.mxu3 %v1598_v43 }
 0xc11   :  { %1262 = vrot.lane.b32.xlu1 %v1239_v46, %s1819_s25  ;;  %v1597_v46 = vld [vmem:[%s2395_s7 + $0x58] sm:$0xff]  ;;  %s2403_s25 = smov 128  }
 0xc12   :  { %1429 = vmatpush.msrb.mxu3 %v1597_v46 }
 0xc37   :  { %v1139_v2 = vpop.f32.mrf.mxu1 }
 0xc38   :  { %1254 = vrot.lane.b32.xlu0 %v1139_v2, %s2402_s3 }
 0xc5a   :  { %v1261_v40 = vpop.permute.xlu2 %1260 }
 0xc62   :  { %v1247_v54 = vpop.permute.xlu2 %1246 }
 0xc63   :  { %v1267_v55 = vsel %vm158_vm8, %v939_v44, %v1247_v54  ;;  %v1596_v54 = vld [vmem:[%s2395_s7 + $0x50] sm:$0xff] }
 0xc64   :  { %1430 = vmatpush.msrb.mxu3 %v1596_v54 }
 0xc7b   :  { %v1253_v51 = vpop.permute.xlu1 %1252 }
 0xc7c   :  { %v1268_v52 = vsel %vm194_vm9, %v1266_v50, %v1253_v51 }
 0xc7d   :  { %v1270_v53 = vsel %vm580_vm10, %v1268_v52, %v1261_v40 }
 0xc7e   :  { %1585 = vmatmul.msk.f32.vlgmr.msrb.gmra.mxu0 %vm57_vm0, %v1270_v53 }
 0xc83   :  { %v1263_v56 = vpop.permute.xlu1 %1262 }
 0xcaa   :  { %v1255_v57 = vpop.permute.xlu0 %1254 }
 0xcab   :  { %v1269_v58 = vsel %vm194_vm9, %v1267_v55, %v1255_v57  ;;  %v1595_v55 = vld [vmem:[%s2395_s7 + $0x48] sm:$0xff]  ;;  %v1594_v57 = vld [vmem:[%s2395_s7 + $0x40] sm:$0xff] }
 0xcac   :  { %v1271_v59 = vsel %vm580_vm10, %v1269_v58, %v1263_v56  ;;  %1431 = vmatpush.msrb.mxu3 %v1595_v55  ;;  %v1665_v56 = vld [vmem:[%s2394_s6 + $0x1] ss:$0 sm:$0xff] }
 0xcad   :  { %1586 = vmatmul.msk.f32.gmra.mxu0 %vm57_vm0, %v1271_v59 }
 0xcae   :  { %1432 = vmatpush.msrb.mxu3 %v1594_v57 }
 0xcfb   :  { %v1300_v61 = vpop.f32.mrf.mxu0 }
 0xcfc   :  { %v1306_v62 = vadd.f32 %v1300_v61, %v2133_v0 }
 0xcfe   :  { %v2308_v3 = vadd.f32 %v1308_v60, %v1306_v62 }
 0xd00   :  { %v1311_v4 = vsel %vm57_vm0, %v2308_v3, 0.0 }
 0xd01   :  { %1312 = vadd.xlane.f32.xlu2 %v1311_v4 }
 0xd2a   :  { %v1303_v5 = vpop.f32.mrf.mxu0 }
 0xd2b   :  { %v1307_v6 = vadd.f32 %v1303_v5, %v2138_v47  ;;  %v1442_v5 = vperm.slane %v2163_v63, 5 }
 0xd2d   :  { %v2313_v7 = vadd.f32 %v1308_v60, %v1307_v6 }
 0xd2f   :  { %v1314_v8 = vsel %vm57_vm0, %v2313_v7, 0.0 }
 0xd30   :  { %1315 = vadd.xlane.f32.xlu1 %v1314_v8 }
 0xd74   :  { %v1313_v9 = vpop.xlane.xlu2 %1312 }
 0xd75   :  { %v1317_v1 = vmul.f32 %v1313_v9, %v1897_v10 }
 0xd77   :  { %v1319_v0 = vsub.f32 %v2308_v3, %v1317_v1 }
 0xd79   :  { %v1321_v11 = vmul.f32 %v1319_v0, %v1319_v0  ;;  %v1354_v34 = vmul.f32 %v1353_v28, %v1319_v0 }
 0xd7b   :  { %v1323_v12 = vsel %vm57_vm0, %v1321_v11, 0.0 }
 0xd7c   :  { %1324 = vadd.xlane.f32.xlu0 %v1323_v12 }
 0xda3   :  { %v1316_v14 = vpop.xlane.xlu1 %1315 }
 0xda4   :  { %v1318_v15 = vmul.f32 %v1316_v14, %v1897_v10 }
 0xda6   :  { %v1320_v47 = vsub.f32 %v2313_v7, %v1318_v15 }
 0xda8   :  { %v1322_v16 = vmul.f32 %v1320_v47, %v1320_v47  ;;  %v1355_v51 = vmul.f32 %v1353_v28, %v1320_v47 }
 0xdaa   :  { %v1326_v17 = vsel %vm57_vm0, %v1322_v16, 0.0 }
 0xdab   :  { %1327 = vadd.xlane.f32.xlu2 %v1326_v17 }
 0xdef   :  { %v1325_v22 = vpop.xlane.xlu0 %1324 }
 0xdf0   :  { %v1329_v23 = vmul.f32 0.032258064, %v1325_v22 }
 0xdf2   :  { %v1331_v24 = vadd.f32 1e-12, %v1329_v23 }
 0xdf4   :  { %1744 = vrsqrt.f32 %v1331_v24  ;;  %vm1339_vm9 = vweird.f32 %v1331_v24 }
 0xdfa   :  { %v1745_v25 = vpop.eup %1744 }
 0xdfb   :  { %v1334_v26 = vmul.f32 %v1745_v25, %v1331_v24  ;;  %vm1340_vm8 = vweird.f32 %v1745_v25 }
 0xdfc   :  { %vm1341_vm10 = vmor %vm1339_vm9, %vm1340_vm8 }
 0xdfd   :  { %v1335_v18 = vmul.f32 %v1745_v25, %v1334_v26  ;;  %v1445_v26 = vld [vmem:[%s2397_s9] sm:$0x3]  ;;  %s1821_s9 = smov [#allocation5]  }
 0xdfe   :  { %v1488_v28 = vperm.slane %v1445_v26, 0  ;;  %s1502_s4 = sshll.u32 %s1821_s9, 4  ;;  %s1503_s4 = int_to_ptr.vmem [resolvable:$true] %s1502_s4 }
 0xdff   :  { %v1336_v27 = vmul.f32 0.5, %v1335_v18 }
 0xe01   :  { %v1337_v29 = vsub.f32 1.5, %v1336_v27 }
 0xe03   :  { %v1338_v32 = vmul.f32 %v1745_v25, %v1337_v29 }
 0xe05   :  { %v1342_v30 = vsel %vm1341_vm10, %v1745_v25, %v1338_v32  ;;  %v1493_v32 = vperm.slane %v1445_v26, 1 }
 0xe06   :  { %v1356_v36 = vmul.f32 %v1354_v34, %v1342_v30 }
 0xe08   :  { %v1359_v38 = vadd.f32 %v1358_v31, %v1356_v36 }
 0xe0a   :  { %1592 = vmatmul.msk.f32.vlgmr.msrb.gmra.mxu1 %vm57_vm0, %v1359_v38 }
 0xe1e   :  { %v1328_v44 = vpop.xlane.xlu2 %1327 }
 0xe1f   :  { %v1330_v45 = vmul.f32 0.032258064, %v1328_v44 }
 0xe21   :  { %v1332_v2 = vadd.f32 1e-12, %v1330_v45 }
 0xe23   :  { %1746 = vrsqrt.f32 %v1332_v2  ;;  %vm1349_vm13 = vweird.f32 %v1332_v2 }
 0xe29   :  { %v1747_v48 = vpop.eup %1746 }
 0xe2a   :  { %v1344_v33 = vmul.f32 %v1747_v48, %v1332_v2  ;;  %vm1350_vm12 = vweird.f32 %v1747_v48 }
 0xe2b   :  { %vm1351_vm14 = vmor %vm1349_vm13, %vm1350_vm12 }
 0xe2c   :  { %v1345_v35 = vmul.f32 %v1747_v48, %v1344_v33 }
 0xe2e   :  { %v1346_v49 = vmul.f32 0.5, %v1345_v35 }
 0xe30   :  { %v1347_v37 = vsub.f32 1.5, %v1346_v49 }
 0xe32   :  { %v1348_v50 = vmul.f32 %v1747_v48, %v1347_v37 }
 0xe34   :  { %v1352_v40 = vsel %vm1351_vm14, %v1747_v48, %v1348_v50 }
 0xe35   :  { %v1357_v52 = vmul.f32 %v1355_v51, %v1352_v40 }
 0xe37   :  { %v1360_v53 = vadd.f32 %v1358_v31, %v1357_v52 }
 0xe39   :  { %1593 = vmatmul.msk.f32.gmra.mxu1 %vm57_vm0, %v1360_v53 }
 0xe87   :  { %v1394_v58 = vpop.f32.mrf.mxu1 }
 0xe88   :  { %v1395_v59 = vadd.f32 %v1665_v56, %v1394_v58 }
 0xe8a   :  { %v1400_v60 = vmax.f32 %v1395_v59, 0.0 }
 0xe8c   :  { %1602 = vmatmul.msk.f32.vlgmr.msrb.gmra.mxu3 %vm718_vm2, %v1400_v60 }
 0xeb6   :  { %v1397_v61 = vpop.f32.mrf.mxu1 }
 0xeb7   :  { %v1398_v62 = vadd.f32 %v1665_v56, %v1397_v61 }
 0xeb9   :  { %v1401_v4 = vmax.f32 %v1398_v62, 0.0 }
 0xebb   :  { %1603 = vmatmul.msk.f32.gmra.mxu3 %vm718_vm2, %v1401_v4 }
 0xf0f   :  { %v1434_v6 = vpop.f32.mrf.mxu3 }
 0xf10   :  { %v1440_v8 = vadd.f32 %v1434_v6, %v2308_v3 }
 0xf12   :  { %v1443_v9 = vadd.f32 %v1442_v5, %v1440_v8 }
 0xf14   :  { %v1446_v1 = vsel %vm57_vm0, %v1443_v9, 0.0 }
 0xf15   :  { %1447 = vadd.xlane.f32.xlu1 %v1446_v1 }
 0xf3e   :  { %v1437_v0 = vpop.f32.mrf.mxu3 }
 0xf3f   :  { %v1441_v11 = vadd.f32 %v1437_v0, %v2313_v7 }
 0xf41   :  { %v1444_v12 = vadd.f32 %v1442_v5, %v1441_v11 }
 0xf43   :  { %v1449_v14 = vsel %vm57_vm0, %v1444_v12, 0.0 }
 0xf44   :  { %1450 = vadd.xlane.f32.xlu2 %v1449_v14 }
 0xf88   :  { %v1448_v15 = vpop.xlane.xlu1 %1447 }
 0xf89   :  { %v1452_v47 = vmul.f32 %v1448_v15, %v1897_v10 }
 0xf8b   :  { %v1454_v16 = vsub.f32 %v1443_v9, %v1452_v47 }
 0xf8d   :  { %v1456_v17 = vmul.f32 %v1454_v16, %v1454_v16  ;;  %v1489_v34 = vmul.f32 %v1488_v28, %v1454_v16 }
 0xf8f   :  { %v1458_v63 = vsel %vm57_vm0, %v1456_v17, 0.0 }
 0xf90   :  { %1459 = vadd.xlane.f32.xlu1 %v1458_v63 }
 0xfb7   :  { %v1451_v3 = vpop.xlane.xlu2 %1450 }
 0xfb8   :  { %v1453_v19 = vmul.f32 %v1451_v3, %v1897_v10 }
 0xfba   :  { %v1455_v13 = vsub.f32 %v1444_v12, %v1453_v19 }
 0xfbc   :  { %v1457_v20 = vmul.f32 %v1455_v13, %v1455_v13  ;;  %v1490_v48 = vmul.f32 %v1488_v28, %v1455_v13 }
 0xfbe   :  { %v1461_v21 = vsel %vm57_vm0, %v1457_v20, 0.0 }
 0xfbf   :  { %1462 = vadd.xlane.f32.xlu0 %v1461_v21 }
0x1003   :  { %v1460_v7 = vpop.xlane.xlu1 %1459 }
0x1004   :  { %v1464_v22 = vmul.f32 0.032258064, %v1460_v7 }
0x1006   :  { %v1466_v23 = vadd.f32 1e-12, %v1464_v22 }
0x1008   :  { %1748 = vrsqrt.f32 %v1466_v23  ;;  %vm1474_vm1 = vweird.f32 %v1466_v23 }
0x100e   :  { %v1749_v24 = vpop.eup %1748 }
0x100f   :  { %v1469_v25 = vmul.f32 %v1749_v24, %v1466_v23  ;;  %vm1475_vm15 = vweird.f32 %v1749_v24 }
0x1010   :  { %vm1476_vm2 = vmor %vm1474_vm1, %vm1475_vm15 }
0x1011   :  { %v1470_v18 = vmul.f32 %v1749_v24, %v1469_v25 }
0x1013   :  { %v1471_v27 = vmul.f32 0.5, %v1470_v18 }
0x1015   :  { %v1472_v29 = vsub.f32 1.5, %v1471_v27 }
0x1017   :  { %v1473_v10 = vmul.f32 %v1749_v24, %v1472_v29 }
0x1019   :  { %v1477_v31 = vsel %vm1476_vm2, %v1749_v24, %v1473_v10 }
0x101a   :  { %v1491_v30 = vmul.f32 %v1489_v34, %v1477_v31 }
0x101c   :  { %v1494_v36 = vadd.f32 %v1493_v32, %v1491_v30 }
0x101e   :  { %1496 = vst.msk [vmem:[#allocation5] sm:$0xff] %vm57_vm0, %v1494_v36 }
0x1032   :  { %v1463_v38 = vpop.xlane.xlu0 %1462 }
0x1033   :  { %v1465_v39 = vmul.f32 0.032258064, %v1463_v38 }
0x1035   :  { %v1467_v41 = vadd.f32 1e-12, %v1465_v39 }
0x1037   :  { %1750 = vrsqrt.f32 %v1467_v41  ;;  %vm1484_vm4 = vweird.f32 %v1467_v41 }
0x103d   :  { %v1751_v42 = vpop.eup %1750 }
0x103e   :  { %v1479_v43 = vmul.f32 %v1751_v42, %v1467_v41  ;;  %vm1485_vm3 = vweird.f32 %v1751_v42 }
0x103f   :  { %vm1486_vm5 = vmor %vm1484_vm4, %vm1485_vm3 }
0x1040   :  { %v1480_v44 = vmul.f32 %v1751_v42, %v1479_v43 }
0x1042   :  { %v1481_v45 = vmul.f32 0.5, %v1480_v44 }
0x1044   :  { %v1482_v46 = vsub.f32 1.5, %v1481_v45 }
0x1046   :  { %v1483_v2 = vmul.f32 %v1751_v42, %v1482_v46 }
0x1048   :  { %v1487_v33 = vsel %vm1486_vm5, %v1751_v42, %v1483_v2 }
0x1049   :  { %v1492_v35 = vmul.f32 %v1490_v48, %v1487_v33 }
0x104b   :  { %v1495_v49 = vadd.f32 %v1493_v32, %v1492_v35 }
0x104d   :  { %1497 = vst.msk [vmem:[#allocation5 + $0x8] sm:$0xff] %vm57_vm0, %v1495_v49 }
0x104e   :  { %1510 = dma.vmem_to_hbm [thread:$0]  %s1503_s4, 256, %s1505_s24, [#allocation4], %s2403_s25, %s2403_s25, %s1806_s19  }
0x104f   :  { %1802 = dma.done.wait [#allocation4], 256  }
0x1050   :  { %1803 = vsyncadd [#allocation4], 4294967040 }
0x1051   :  { %1515 = vsyncpa [#allocation3], 1 }
0x1052   :  { %1516 = vsyncpa [#allocation4], 1 }

</bundles_post_ra>
